<compile_context>
chip_gen: v6e
topology: v6e:2x2x1
jax: 0.10.0
libtpu: 0.0.40
codegen_flags: <defaults>
</compile_context>

<pallas_src>
import functools

import jax
import jax.numpy as jnp
from jax.experimental import pallas as pl
from jax.experimental.pallas import tpu as pltpu


def _round_up(x, m):
    return (x + m - 1) // m * m


# ----------------------------------------------------------------------------
# Glue: im2col (pure JAX, static unrolled over the small kernel window)
# ----------------------------------------------------------------------------
def _im2col(x, kh, kw, stride, padding):
    """x: (N, C, H, W) -> patches (N*Ho*Wo, C*kh*kw), Ho, Wo."""
    N, C, H, W = x.shape
    xp = jnp.pad(x, ((0, 0), (0, 0), (padding, padding), (padding, padding)))
    Ho = (H + 2 * padding - kh) // stride + 1
    Wo = (W + 2 * padding - kw) // stride + 1
    cols = []
    for i in range(kh):
        for j in range(kw):
            cols.append(xp[:, :, i:i + stride * Ho:stride, j:j + stride * Wo:stride])
    cols = jnp.stack(cols, axis=-1)            # (N, C, Ho, Wo, kh*kw)
    cols = cols.transpose(0, 2, 3, 1, 4)       # (N, Ho, Wo, C, kh*kw)
    return cols.reshape(N * Ho * Wo, C * kh * kw), Ho, Wo


# ----------------------------------------------------------------------------
# Pass 1: conv GEMM + per-channel stats accumulation (resident output block)
# ----------------------------------------------------------------------------
def _stats_kernel(mask_col, p_ref, w_ref, stats_ref):
    i = pl.program_id(0)

    @pl.when(i == 0)
    def _():
        stats_ref[...] = jnp.zeros_like(stats_ref)

    # (tm, Kp) @ (Kp, Cpad) -> (tm, Cpad) on the MXU (bf16 in, f32 acc).
    y = jnp.dot(p_ref[...], w_ref[...], preferred_element_type=jnp.float32)
    # Mask conv was fused into the GEMM: column `mask_col` holds sum(mask patch).
    m = (y[:, mask_col:mask_col + 1] > 0.0).astype(jnp.float32)   # (tm, 1)
    ym = y * m

    stats_ref[0:1, :] = stats_ref[0:1, :] + jnp.sum(y, axis=0, keepdims=True)   # S1
    stats_ref[1:2, :] = stats_ref[1:2, :] + jnp.sum(ym, axis=0, keepdims=True)  # S2
    stats_ref[2:3, :] = stats_ref[2:3, :] + jnp.sum(y * ym, axis=0, keepdims=True)  # S3
    stats_ref[3:4, :] = stats_ref[3:4, :] + jnp.sum(m)                           # Sm


# ----------------------------------------------------------------------------
# Pass 2: conv GEMM + folded BN scale/shift + relu + mask (lane-dense output)
# ----------------------------------------------------------------------------
def _normalize_kernel(mask_col, p_ref, w_ref, ss_ref, out_ref):
    y = jnp.dot(p_ref[...], w_ref[...], preferred_element_type=jnp.float32)
    m = (y[:, mask_col:mask_col + 1] > 0.0).astype(jnp.float32)   # (tm, 1)
    scale = ss_ref[0:1, :]                                        # gamma*rsqrt(var+eps)
    shift = ss_ref[1:2, :]                                        # beta - mean*scale
    out = jnp.maximum(y * scale + shift, 0.0) * m                 # relu + single mask mul
    # Pack the mask into its own lane of the 128-wide output slab.
    col = jax.lax.broadcasted_iota(jnp.int32, out.shape, 1)
    out_ref[...] = jnp.where(col == mask_col, m, out)


# ----------------------------------------------------------------------------
# Wrapper
# ----------------------------------------------------------------------------
def basic_conv2d(x, mask, weight, gamma, beta, *, stride=1, padding=1, eps=1e-3):
    """x: (N, Cin, H, W), mask: (N, 1, H, W), weight: (Cout, Cin, kh, kw)."""
    N, Cin, H, W = x.shape
    Cout, _, kh, kw = weight.shape

    patches, Ho, Wo = _im2col(x, kh, kw, stride, padding)      # (M, Cin*kh*kw)
    mpatches, _, _ = _im2col(mask, kh, kw, stride, padding)    # (M, kh*kw)
    M = N * Ho * Wo
    Kc = Cin * kh * kw
    Km = kh * kw
    Ktot = Kc + Km
    Kp = _round_up(Ktot, 128)          # lane-dense K
    mask_col = Cout                    # GEMM output column carrying the mask sum
    Cpad = _round_up(Cout + 1, 128)    # lane-dense output width

    # Tile over M; size from an explicit VMEM budget (double-buffered bf16
    # patches in + f32 output out + weights + scale/shift).  Safe on v7x 64MiB.
    vmem_budget = 32 * 1024 * 1024

    def _tile_bytes(t):
        return (2 * t * Kp * 2) + (2 * t * Cpad * 4) + (Kp * Cpad * 2) + (8 * Cpad * 4)

    tm = 1024
    while tm > 16 and _tile_bytes(tm) > vmem_budget:
        tm //= 2
    tm = max(16, min(tm, _round_up(M, 16)))
    Mp = _round_up(M, tm)
    n_tiles = Mp // tm

    # Fused patches: [conv patches | mask patches | zero pad], bf16, rows -> Mp.
    p = jnp.zeros((Mp, Kp), jnp.bfloat16)
    p = p.at[:M, :Kc].set(patches.astype(jnp.bfloat16))
    p = p.at[:M, Kc:Ktot].set(mpatches.astype(jnp.bfloat16))

    # Fused weight: conv weights in cols [0, Cout); ones column for the mask conv.
    w = jnp.zeros((Kp, Cpad), jnp.bfloat16)
    w = w.at[:Kc, :Cout].set(weight.reshape(Cout, Kc).T.astype(jnp.bfloat16))
    w = w.at[Kc:Ktot, mask_col].set(jnp.ones((Km,), jnp.bfloat16))

    # ---- pass 1: per-channel statistics -------------------------------------
    stats = pl.pallas_call(
        functools.partial(_stats_kernel, mask_col),
        out_shape=jax.ShapeDtypeStruct((8, Cpad), jnp.float32),
        grid_spec=pl.GridSpec(
            grid=(n_tiles,),
            in_specs=[
                pl.BlockSpec((tm, Kp), lambda i: (i, 0)),
                pl.BlockSpec((Kp, Cpad), lambda i: (0, 0)),
            ],
            out_specs=pl.BlockSpec((8, Cpad), lambda i: (0, 0)),
        ),
        compiler_params=pltpu.CompilerParams(
            dimension_semantics=("arbitrary",),
            vmem_limit_bytes=vmem_budget),
    )(p, w)

    # ---- BN finalize (tiny per-channel math; padded channels stay zero) -----
    S1, S2, S3, Sm = stats[0], stats[1], stats[2], stats[3]
    cnt = jnp.maximum(Sm, 1e-5)
    mean = S1 / cnt
    var = jnp.maximum((S3 - 2.0 * mean * S2 + mean * mean * Sm) / cnt, 0.0)
    gamma_pad = jnp.zeros((Cpad,), jnp.float32).at[:Cout].set(gamma.astype(jnp.float32))
    beta_pad = jnp.zeros((Cpad,), jnp.float32).at[:Cout].set(beta.astype(jnp.float32))
    scale = gamma_pad * jax.lax.rsqrt(var + eps)
    shift = beta_pad - mean * scale
    ss = jnp.zeros((8, Cpad), jnp.float32).at[0].set(scale).at[1].set(shift)

    # ---- pass 2: normalize + relu + mask (parallel across TensorCores) ------
    out_full = pl.pallas_call(
        functools.partial(_normalize_kernel, mask_col),
        out_shape=jax.ShapeDtypeStruct((Mp, Cpad), jnp.float32),
        grid_spec=pl.GridSpec(
            grid=(n_tiles,),
            in_specs=[
                pl.BlockSpec((tm, Kp), lambda i: (i, 0)),
                pl.BlockSpec((Kp, Cpad), lambda i: (0, 0)),
                pl.BlockSpec((8, Cpad), lambda i: (0, 0)),
            ],
            out_specs=pl.BlockSpec((tm, Cpad), lambda i: (i, 0)),
        ),
        compiler_params=pltpu.CompilerParams(
            dimension_semantics=("parallel",),
            vmem_limit_bytes=vmem_budget),
    )(p, w, ss)

    # Back to NCHW (module interface is NCHW; drop these if the caller is NHWC).
    out = out_full[:M, :Cout].reshape(N, Ho, Wo, Cout).transpose(0, 3, 1, 2)
    m_out = out_full[:M, mask_col:mask_col + 1].reshape(N, Ho, Wo, 1).transpose(0, 3, 1, 2)
    return out, m_out


# ----------------------------------------------------------------------------
if __name__ == "__main__":
    key = jax.random.PRNGKey(0)
    k_x, k_m, k_w = jax.random.split(key, 3)

    # Shapes consistent with BasicConv2d(in=4, out=8, kernel_size=3, padding=1)
    N, Cin, H, W = 2, 4, 16, 16
    Cout, kh, kw = 8, 3, 3

    x = jax.random.normal(k_x, (N, Cin, H, W), dtype=jnp.float32)
    mask = (jax.random.uniform(k_m, (N, 1, H, W)) > 0.3).astype(jnp.float32)

    # conv.weight: (Cout, Cin, kh, kw); bn.weight = ones, bn.bias = zeros
    weight = 0.1 * jax.random.normal(k_w, (Cout, Cin, kh, kw), dtype=jnp.float32)
    gamma = jnp.ones((Cout,), dtype=jnp.float32)
    beta = jnp.zeros((Cout,), dtype=jnp.float32)

    out, m_out = basic_conv2d(x, mask, weight, gamma, beta,
                              stride=1, padding=1, eps=1e-3)
    jax.block_until_ready((out, m_out))

    assert out.shape == (N, Cout, H, W)
    assert m_out.shape == (N, 1, H, W)
    print("KERNEL_OK")
</pallas_src>

<mosaic_0001>
module attributes {stable_mosaic.version = 11 : i64} {
  func.func @_stats_kernel(%arg0: i32, %arg1: memref<512x128xbf16, #tpu.memory_space<vmem>>, %arg2: memref<128x128xbf16, #tpu.memory_space<vmem>>, %arg3: memref<8x128xf32, #tpu.memory_space<vmem>>) attributes {dimension_semantics = [#tpu.dimension_semantics<arbitrary>], iteration_bounds = array<i64: 1>, scalar_prefetch = 0 : i64, scratch_operands = 0 : i64, tpu.core_type = #tpu.core_type<tc>, window_params = [{transform_indices = @transform_0, window_bounds = array<i64: 512, 128>}, {pipeline_mode = #tpu.pipeline_mode<synchronous>, transform_indices = @transform_1, window_bounds = array<i64: 128, 128>}, {pipeline_mode = #tpu.pipeline_mode<synchronous>, transform_indices = @transform_2, window_bounds = array<i64: 8, 128>}]} {
    %c0_i32 = arith.constant 0 : i32
    %0 = arith.cmpi eq, %arg0, %c0_i32 : i32
    %1 = arith.extui %0 : i1 to i32
    %c0_i32_0 = arith.constant 0 : i32
    %2 = arith.cmpi ne, %1, %c0_i32_0 : i32
    scf.if %2 {
      %cst_22 = arith.constant 0.000000e+00 : f32
      %37 = vector.broadcast %cst_22 : f32 to vector<8x128xf32>
      %c0_23 = arith.constant 0 : index
      %c0_24 = arith.constant 0 : index
      %38 = vector.load %arg3[%c0_23, %c0_24] : memref<8x128xf32, #tpu.memory_space<vmem>>, vector<8x128xf32>
      tpu.vector_store %arg3[%c0_23, %c0_24], %37 {strides = array<i32>} : memref<8x128xf32, #tpu.memory_space<vmem>>, vector<8x128xf32>,
    } else {
    }
    %c0 = arith.constant 0 : index
    %c0_1 = arith.constant 0 : index
    %3 = vector.load %arg1[%c0, %c0_1] : memref<512x128xbf16, #tpu.memory_space<vmem>>, vector<512x128xbf16>
    %c0_2 = arith.constant 0 : index
    %c0_3 = arith.constant 0 : index
    %4 = vector.load %arg2[%c0_2, %c0_3] : memref<128x128xbf16, #tpu.memory_space<vmem>>, vector<128x128xbf16>
    %cst = arith.constant dense<0.000000e+00> : vector<512x128xf32>
    %5 = tpu.matmul %3, %4, %cst {dimension_numbers = #tpu.dot_dimension_numbers<[1], [0], [0], [1], [0, 0, 1, 1], [], []>} : vector<512x128xbf16>, vector<128x128xbf16>, vector<512x128xf32> -> vector<512x128xf32>
    %6 = vector.extract_strided_slice %5 {offsets = [0, 8], sizes = [512, 1], strides = [1, 1]} : vector<512x128xf32> to vector<512x1xf32>
    %cst_4 = arith.constant 0.000000e+00 : f32
    %7 = vector.broadcast %cst_4 : f32 to vector<512x1xf32>
    %8 = arith.cmpf ogt, %6, %7 : vector<512x1xf32>
    %9 = arith.extui %8 : vector<512x1xi1> to vector<512x1xi32>
    %10 = arith.sitofp %9 : vector<512x1xi32> to vector<512x1xf32>
    %11 = vector.broadcast %10 : vector<512x1xf32> to vector<512x128xf32>
    %12 = arith.mulf %5, %11 : vector<512x128xf32>
    %c0_5 = arith.constant 0 : index
    %c0_6 = arith.constant 0 : index
    %13 = vector.load %arg3[%c0_5, %c0_6] : memref<8x128xf32, #tpu.memory_space<vmem>>, vector<1x128xf32>
    %cst_7 = arith.constant dense<0.000000e+00> : vector<128xf32>
    %14 = vector.multi_reduction <add>, %5, %cst_7 [0] : vector<512x128xf32> to vector<128xf32>
    %15 = vector.shape_cast %14 : vector<128xf32> to vector<1x128xf32>
    %16 = arith.addf %13, %15 : vector<1x128xf32>
    %c0_8 = arith.constant 0 : index
    %c0_9 = arith.constant 0 : index
    %17 = vector.load %arg3[%c0_8, %c0_9] : memref<8x128xf32, #tpu.memory_space<vmem>>, vector<1x128xf32>
    tpu.vector_store %arg3[%c0_8, %c0_9], %16 {strides = array<i32>} : memref<8x128xf32, #tpu.memory_space<vmem>>, vector<1x128xf32>,
    %c1 = arith.constant 1 : index
    %c0_10 = arith.constant 0 : index
    %18 = vector.load %arg3[%c1, %c0_10] : memref<8x128xf32, #tpu.memory_space<vmem>>, vector<1x128xf32>
    %cst_11 = arith.constant dense<0.000000e+00> : vector<128xf32>
    %19 = vector.multi_reduction <add>, %12, %cst_11 [0] : vector<512x128xf32> to vector<128xf32>
    %20 = vector.shape_cast %19 : vector<128xf32> to vector<1x128xf32>
    %21 = arith.addf %18, %20 : vector<1x128xf32>
    %c1_12 = arith.constant 1 : index
    %c0_13 = arith.constant 0 : index
    %22 = vector.load %arg3[%c1_12, %c0_13] : memref<8x128xf32, #tpu.memory_space<vmem>>, vector<1x128xf32>
    tpu.vector_store %arg3[%c1_12, %c0_13], %21 {strides = array<i32>} : memref<8x128xf32, #tpu.memory_space<vmem>>, vector<1x128xf32>,
    %c2 = arith.constant 2 : index
    %c0_14 = arith.constant 0 : index
    %23 = vector.load %arg3[%c2, %c0_14] : memref<8x128xf32, #tpu.memory_space<vmem>>, vector<1x128xf32>
    %24 = arith.mulf %5, %12 : vector<512x128xf32>
    %cst_15 = arith.constant dense<0.000000e+00> : vector<128xf32>
    %25 = vector.multi_reduction <add>, %24, %cst_15 [0] : vector<512x128xf32> to vector<128xf32>
    %26 = vector.shape_cast %25 : vector<128xf32> to vector<1x128xf32>
    %27 = arith.addf %23, %26 : vector<1x128xf32>
    %c2_16 = arith.constant 2 : index
    %c0_17 = arith.constant 0 : index
    %28 = vector.load %arg3[%c2_16, %c0_17] : memref<8x128xf32, #tpu.memory_space<vmem>>, vector<1x128xf32>
    tpu.vector_store %arg3[%c2_16, %c0_17], %27 {strides = array<i32>} : memref<8x128xf32, #tpu.memory_space<vmem>>, vector<1x128xf32>,
    %c3 = arith.constant 3 : index
    %c0_18 = arith.constant 0 : index
    %29 = vector.load %arg3[%c3, %c0_18] : memref<8x128xf32, #tpu.memory_space<vmem>>, vector<1x128xf32>
    %30 = vector.shape_cast %10 : vector<512x1xf32> to vector<1x512x1xf32>
    %cst_19 = arith.constant dense<0.000000e+00> : vector<1xf32>
    %31 = vector.multi_reduction <add>, %30, %cst_19 [1, 2] : vector<1x512x1xf32> to vector<1xf32>
    %32 = vector.shape_cast %31 : vector<1xf32> to vector<1x1x1xf32>
    %33 = vector.extract %32[0, 0, 0] : f32 from vector<1x1x1xf32>
    %34 = vector.broadcast %33 : f32 to vector<1x128xf32>
    %35 = arith.addf %29, %34 : vector<1x128xf32>
    %c3_20 = arith.constant 3 : index
    %c0_21 = arith.constant 0 : index
    %36 = vector.load %arg3[%c3_20, %c0_21] : memref<8x128xf32, #tpu.memory_space<vmem>>, vector<1x128xf32>
    tpu.vector_store %arg3[%c3_20, %c0_21], %35 {strides = array<i32>} : memref<8x128xf32, #tpu.memory_space<vmem>>, vector<1x128xf32>,
    return
  }
  func.func @transform_0(%arg0: i32) -> (i32, i32) {
    %c0_i32 = arith.constant 0 : i32
    %c0_i32_0 = arith.constant 0 : i32
    return %arg0, %c0_i32 : i32, i32
  }
  func.func @transform_1(%arg0: i32) -> (i32, i32) {
    %c0_i32 = arith.constant 0 : i32
    %c0_i32_0 = arith.constant 0 : i32
    %c0_i32_1 = arith.constant 0 : i32
    return %c0_i32, %c0_i32_0 : i32, i32
  }
  func.func @transform_2(%arg0: i32) -> (i32, i32) {
    %c0_i32 = arith.constant 0 : i32
    %c0_i32_0 = arith.constant 0 : i32
    %c0_i32_1 = arith.constant 0 : i32
    return %c0_i32, %c0_i32_0 : i32, i32
  }
}

</mosaic_0001>

<bundles_post_ra>
// kernel: tpu_custom_call.1
= control target key start
LH: loop header
LB: loop body
LE: loop exit
PB: predicated region body
PF: predicated region fallthrough
CT: control target
= control target key end

     0   :  { %7 = vsyncpa [#allocation3], 0  ;;  %s3157_s0 = inlined_call_operand.hbm [shape: bf16[512,128], index: 0, kind: input, shape index: {}]   ;;  %s3158_s1 = inlined_call_operand.hbm [shape: bf16[128,128], index: 1, kind: input, shape index: {}]   ;;  %s3159_s2 = inlined_call_operand.hbm [shape: f32[8,128], index: 2, kind: output, shape index: {}]  }
   0x1   :  { %8 = vsyncpa [#allocation6], 0 }
   0x2   :  { %9 = vsyncpa [#allocation4], 0  ;;  %s2318_s9 = smov [#allocation2]  }
   0x3   :  { %s15_s10 = sshll.u32 %s2318_s9, 4  ;;  %s16_s10 = int_to_ptr.vmem [resolvable:$true] %s15_s10 }
   0x4   :  { %s2260_s11 = scalar_lea.vmem %s16_s10, 4096  ;;  %p2265_p1 = scmp.lt.s32.totalorder %s16_s10, %s16_s10 }
   0x5   :  { %p2261_p0 = scmp.ne.s32.totalorder %s16_s10, %s2260_s11  ;;  %p2266_p2 = scmp.lt.s32.totalorder %s2260_s11, %s2260_s11 }
   0x7   :  { %p2267_p3 = por %p2266_p2, %p2265_p1 }
   0x9   :  { %p2268_p4 = pnand %p2267_p3, %p2261_p0 }
   0xb   :  { %2271 = shalt.err (!%p2268_p4)
}
   0xc   :  { %s2319_s12 = smov 64   ;;  %s2320_s13 = smov 4  }
   0xd   :  { %21 = dma.hbm_to_vmem [thread:$0]  %s3157_s0, 4096, %s16_s10, [#allocation3], %s2319_s12, %s2319_s12, %s2320_s13  }
   0xe   :  { %s2321_s16 = smov [#allocation5]  }
   0xf   :  { %s27_s17 = sshll.u32 %s2321_s16, 4  ;;  %s28_s17 = int_to_ptr.vmem [resolvable:$true] %s27_s17 }
  0x10   :  { %s2280_s18 = scalar_lea.vmem %s28_s17, 1024  ;;  %p2285_p6 = scmp.lt.s32.totalorder %s28_s17, %s28_s17 }
  0x11   :  { %p2281_p5 = scmp.ne.s32.totalorder %s28_s17, %s2280_s18  ;;  %p2286_p7 = scmp.lt.s32.totalorder %s2280_s18, %s2280_s18 }
  0x13   :  { %p2287_p8 = por %p2286_p7, %p2285_p6 }
  0x15   :  { %p2288_p9 = pnand %p2287_p8, %p2281_p5 }
  0x17   :  { %2291 = shalt.err (!%p2288_p9)
}
  0x18   :  { %33 = dma.hbm_to_vmem [thread:$0]  %s3158_s1, 1024, %s28_s17, [#allocation6], %s2319_s12, %s2319_s12, %s2320_s13  }
  0x19   :  { %2312 = dma.done.wait [#allocation3], 4096  }
  0x1a   :  { %2313 = vsyncadd [#allocation3], 4294963200 }
  0x1b   :  { %2314 = dma.done.wait [#allocation6], 1024  }
  0x1c   :  { %2315 = vsyncadd [#allocation6], 4294966272  ;;  %v2212_v0 = vld [vmem:[#allocation5 + $0x38] sm:$0xff]   ;;  %v2213_v1 = vld [vmem:[#allocation5 + $0x30] sm:$0xff]   ;;  %v3160_v40 = vmov 0.0   ;;  %v2323_v41 = vmov 8  }
  0x1d   :  { %2004 = vmatprep.subr.bf16.mxu0 %v2212_v0  ;;  %2084 = vmatprep.subr.bf16.mxu1 %v2212_v0  ;;  %v2214_v2 = vld [vmem:[#allocation5 + $0x28] sm:$0xff]   ;;  %v2215_v3 = vld [vmem:[#allocation5 + $0x20] sm:$0xff]   ;;  %v2216_v5 = vld [vmem:[#allocation5 + $0x18] sm:$0xff]   ;;  %45 = vst [vmem:[#allocation7] sm:$0xff] %v3160_v40  ;;  %s2324_s0 = smov 120   ;;  %s2325_s1 = smov [#allocation7]  }
  0x1e   :  { %2005 = vmatpush3.bf16.msra.mxu0 %v2212_v0  ;;  %2092 = vmatpush3.bf16.msra.mxu1 %v2212_v0  ;;  %v2220_v4 = vld [vmem:[#allocation2] sm:$0xff]   ;;  %v2217_v6 = vld [vmem:[#allocation5 + $0x10] sm:$0xff]   ;;  %v2218_v7 = vld [vmem:[#allocation5 + $0x8] sm:$0xff]   ;;  %s1850_s21 = sshll.u32 %s2325_s1, 4  ;;  %s1851_s21 = int_to_ptr.vmem [resolvable:$true] %s1850_s21 }
  0x1f   :  { %2006 = vmatprep.subr.bf16.mxu0 %v2213_v1  ;;  %2085 = vmatprep.subr.bf16.mxu1 %v2213_v1  ;;  %v2219_v8 = vld [vmem:[#allocation5] sm:$0xff]   ;;  %v2221_v10 = vld [vmem:[#allocation2 + $0x8] sm:$0xff]   ;;  %v2222_v11 = vld [vmem:[#allocation2 + $0x10] sm:$0xff]   ;;  %s2292_s23 = scalar_lea.vmem %s1851_s21, 128  ;;  %p2297_p11 = scmp.lt.s32.totalorder %s1851_s21, %s1851_s21 }
  0x20   :  { %2020 = vmatprep.mubr.bf16.mxu0 %v2220_v4  ;;  %v2236_v9 = vld [vmem:[#allocation2 + $0x80] sm:$0xff]   ;;  %v2237_v12 = vld [vmem:[#allocation2 + $0x88] sm:$0xff]   ;;  %v2238_v13 = vld [vmem:[#allocation2 + $0x90] sm:$0xff]   ;;  %2110 = vset.pattern.permute.xlu0 %v2323_v41  ;;  %p2293_p10 = scmp.ne.s32.totalorder %s1851_s21, %s2292_s23  ;;  %p2298_p12 = scmp.lt.s32.totalorder %s2292_s23, %s2292_s23 }
  0x21   :  { %2052 = vmatprep.mubr.bf16.mxu1 %v2236_v9  ;;  %v2223_v14 = vld [vmem:[#allocation2 + $0x18] sm:$0xff]   ;;  %v2224_v15 = vld [vmem:[#allocation2 + $0x20] sm:$0xff]   ;;  %v2225_v18 = vld [vmem:[#allocation2 + $0x28] sm:$0xff]   ;;  %2126 = vset.pattern.permute.xlu1 %v2323_v41 }
  0x22   :  { %2007 = vmatpush3.bf16.msra.mxu0 %v2213_v1  ;;  %2093 = vmatpush3.bf16.msra.mxu1 %v2213_v1  ;;  %v2239_v16 = vld [vmem:[#allocation2 + $0x98] sm:$0xff]   ;;  %v2240_v17 = vld [vmem:[#allocation2 + $0xa0] sm:$0xff]   ;;  %v2241_v19 = vld [vmem:[#allocation2 + $0xa8] sm:$0xff]   ;;  %p2299_p13 = por %p2298_p12, %p2297_p11 }
  0x23   :  { %2008 = vmatprep.subr.bf16.mxu0 %v2214_v2  ;;  %2086 = vmatprep.subr.bf16.mxu1 %v2214_v2  ;;  %v2226_v20 = vld [vmem:[#allocation2 + $0x30] sm:$0xff]   ;;  %v2227_v22 = vld [vmem:[#allocation2 + $0x38] sm:$0xff]   ;;  %v2228_v24 = vld [vmem:[#allocation2 + $0x40] sm:$0xff]  }
  0x24   :  { %v2242_v21 = vld [vmem:[#allocation2 + $0xb0] sm:$0xff]   ;;  %v2243_v23 = vld [vmem:[#allocation2 + $0xb8] sm:$0xff]   ;;  %v2244_v25 = vld [vmem:[#allocation2 + $0xc0] sm:$0xff]   ;;  %p2300_p0 = pnand %p2299_p13, %p2293_p10 }
  0x25   :  { %v2229_v26 = vld [vmem:[#allocation2 + $0x48] sm:$0xff]   ;;  %v2230_v28 = vld [vmem:[#allocation2 + $0x50] sm:$0xff]   ;;  %v2231_v30 = vld [vmem:[#allocation2 + $0x58] sm:$0xff]  }
  0x26   :  { %2009 = vmatpush3.bf16.msra.mxu0 %v2214_v2  ;;  %2094 = vmatpush3.bf16.msra.mxu1 %v2214_v2  ;;  %v2245_v27 = vld [vmem:[#allocation2 + $0xc8] sm:$0xff]   ;;  %v2246_v29 = vld [vmem:[#allocation2 + $0xd0] sm:$0xff]   ;;  %v2247_v31 = vld [vmem:[#allocation2 + $0xd8] sm:$0xff]  }
  0x27   :  { %2010 = vmatprep.subr.bf16.mxu0 %v2215_v3  ;;  %2087 = vmatprep.subr.bf16.mxu1 %v2215_v3  ;;  %v2232_v32 = vld [vmem:[#allocation2 + $0x60] sm:$0xff]   ;;  %v2233_v34 = vld [vmem:[#allocation2 + $0x68] sm:$0xff]   ;;  %v2234_v36 = vld [vmem:[#allocation2 + $0x70] sm:$0xff]  }
  0x28   :  { %v2248_v33 = vld [vmem:[#allocation2 + $0xe0] sm:$0xff]   ;;  %v2249_v35 = vld [vmem:[#allocation2 + $0xe8] sm:$0xff]   ;;  %v2250_v37 = vld [vmem:[#allocation2 + $0xf0] sm:$0xff]  }
  0x29   :  { %v2235_v38 = vld [vmem:[#allocation2 + $0x78] sm:$0xff]  }
  0x2a   :  { %2011 = vmatpush3.bf16.msra.mxu0 %v2215_v3  ;;  %2095 = vmatpush3.bf16.msra.mxu1 %v2215_v3  ;;  %v2251_v39 = vld [vmem:[#allocation2 + $0xf8] sm:$0xff]  }
  0x2b   :  { %2012 = vmatprep.subr.bf16.mxu0 %v2216_v5  ;;  %2088 = vmatprep.subr.bf16.mxu1 %v2216_v5 }
  0x2e   :  { %2013 = vmatpush3.bf16.msra.mxu0 %v2216_v5  ;;  %2096 = vmatpush3.bf16.msra.mxu1 %v2216_v5 }
  0x2f   :  { %2014 = vmatprep.subr.bf16.mxu0 %v2217_v6  ;;  %2089 = vmatprep.subr.bf16.mxu1 %v2217_v6 }
  0x32   :  { %2015 = vmatpush3.bf16.msra.mxu0 %v2217_v6  ;;  %2097 = vmatpush3.bf16.msra.mxu1 %v2217_v6 }
  0x33   :  { %2016 = vmatprep.subr.bf16.mxu0 %v2218_v7  ;;  %2090 = vmatprep.subr.bf16.mxu1 %v2218_v7 }
  0x36   :  { %2017 = vmatpush3.bf16.msra.mxu0 %v2218_v7  ;;  %2098 = vmatpush3.bf16.msra.mxu1 %v2218_v7 }
  0x37   :  { %2018 = vmatprep.subr.bf16.mxu0 %v2219_v8  ;;  %2091 = vmatprep.subr.bf16.mxu1 %v2219_v8 }
  0x3a   :  { %2019 = vmatpush3.bf16.msra.mxu0 %v2219_v8  ;;  %2099 = vmatpush3.bf16.msra.mxu1 %v2219_v8 }
  0x3d   :  { %2021 = vmatmul.mubr.bf16.vlgmr.msra.gmra.mxu0 %v2221_v10  ;;  %2053 = vmatmul.mubr.bf16.vlgmr.msra.gmra.mxu1 %v2237_v12 }
  0x3e   :  { %2024 = vmatprep.mubr.bf16.mxu0 %v2222_v11  ;;  %2056 = vmatprep.mubr.bf16.mxu1 %v2238_v13 }
  0x45   :  { %2025 = vmatmul.mubr.bf16.gmra.mxu0 %v2223_v14  ;;  %2057 = vmatmul.mubr.bf16.gmra.mxu1 %v2239_v16 }
  0x46   :  { %2028 = vmatprep.mubr.bf16.mxu0 %v2224_v15  ;;  %2060 = vmatprep.mubr.bf16.mxu1 %v2240_v17 }
  0x4d   :  { %2029 = vmatmul.mubr.bf16.gmra.mxu0 %v2225_v18  ;;  %2061 = vmatmul.mubr.bf16.gmra.mxu1 %v2241_v19 }
  0x4e   :  { %2032 = vmatprep.mubr.bf16.mxu0 %v2226_v20  ;;  %2064 = vmatprep.mubr.bf16.mxu1 %v2242_v21 }
  0x55   :  { %2033 = vmatmul.mubr.bf16.gmra.mxu0 %v2227_v22  ;;  %2065 = vmatmul.mubr.bf16.gmra.mxu1 %v2243_v23 }
  0x56   :  { %2036 = vmatprep.mubr.bf16.mxu0 %v2228_v24  ;;  %2068 = vmatprep.mubr.bf16.mxu1 %v2244_v25 }
  0x5d   :  { %2037 = vmatmul.mubr.bf16.gmra.mxu0 %v2229_v26  ;;  %2069 = vmatmul.mubr.bf16.gmra.mxu1 %v2245_v27 }
  0x5e   :  { %2040 = vmatprep.mubr.bf16.mxu0 %v2230_v28  ;;  %2072 = vmatprep.mubr.bf16.mxu1 %v2246_v29 }
  0x65   :  { %2041 = vmatmul.mubr.bf16.gmra.mxu0 %v2231_v30  ;;  %2073 = vmatmul.mubr.bf16.gmra.mxu1 %v2247_v31 }
  0x66   :  { %2044 = vmatprep.mubr.bf16.mxu0 %v2232_v32  ;;  %2076 = vmatprep.mubr.bf16.mxu1 %v2248_v33 }
  0x6d   :  { %2045 = vmatmul.mubr.bf16.gmra.mxu0 %v2233_v34  ;;  %2077 = vmatmul.mubr.bf16.gmra.mxu1 %v2249_v35 }
  0x6e   :  { %2048 = vmatprep.mubr.bf16.mxu0 %v2234_v36  ;;  %2080 = vmatprep.mubr.bf16.mxu1 %v2250_v37 }
  0x75   :  { %2049 = vmatmul.mubr.bf16.gmra.mxu0 %v2235_v38  ;;  %2081 = vmatmul.mubr.bf16.gmra.mxu1 %v2251_v39 }
  0xfd   :  { %v2348_v42 = vpop.f32.mrf.mxu0  ;;  %v2350_v43 = vpop.f32.mrf.mxu1 }
  0xfe   :  { %3277 = vst [vmem:[#allocation11_spill] sm:$0xff] %v2350_v43  ;;  %vm657_vm0 = vcmp.gt.f32.partialorder %v2348_v42, 0.0 }
  0xff   :  { %v2353_v44 = vpop.f32.mrf.mxu0  ;;  %v1902_v45 = vsel %vm657_vm0, 1.0, %v3160_v40  ;;  %v2359_v47 = vpop.f32.mrf.mxu1 }
 0x100   :  { %1516 = vrot.lane.b32.xlu1 %v1902_v45, %s2324_s0  ;;  %3278 = vst [vmem:[#allocation12_spill] sm:$0xff] %v2359_v47  ;;  %vm655_vm4 = vcmp.gt.f32.partialorder %v2353_v44, 0.0 }
 0x101   :  { %v2357_v46 = vpop.f32.mrf.mxu0  ;;  %v2369_v53 = vpop.f32.mrf.mxu1  ;;  %v1900_v0 = vsel %vm655_vm4, 1.0, %v3160_v40 }
 0x102   :  { %vm658_vm1 = vcmp.gt.f32.partialorder %v2357_v46, 0.0  ;;  %3279 = vst [vmem:[#allocation13_spill] sm:$0xff] %v2369_v53 }
 0x103   :  { %v2362_v48 = vpop.f32.mrf.mxu0  ;;  %v1903_v49 = vsel %vm658_vm1, 1.0, %v3160_v40  ;;  %v2385_v61 = vpop.f32.mrf.mxu1 }
 0x104   :  { %v1232_v50 = vadd.f32 %v2362_v48, %v2353_v44  ;;  %v2111_v51 = vpack.i.bf16 %v1903_v49, %v1902_v45  ;;  %vm656_vm2 = vcmp.gt.f32.partialorder %v2362_v48, 0.0  ;;  %3280 = vst [vmem:[#allocation14_spill] sm:$0xff] %v2385_v61 }
 0x105   :  { %v2367_v52 = vpop.f32.mrf.mxu0  ;;  %v1901_v60 = vsel %vm656_vm2, 1.0, %v3160_v40  ;;  %v2399_v5 = vpop.f32.mrf.mxu1 }
 0x106   :  { %v1233_v54 = vadd.f32 %v2348_v42, %v1232_v50  ;;  %2112 = vperm.xlu0 %2110, %v2111_v51   ;;  %vm661_vm3 = vcmp.gt.f32.partialorder %v2367_v52, 0.0  ;;  %v2116_v3 = vpack.i.bf16 %v1901_v60, %v1900_v0  ;;  %3281 = vst [vmem:[#allocation15_spill] sm:$0xff] %v2399_v5 }
 0x107   :  { %v2374_v55 = vpop.f32.mrf.mxu0  ;;  %v1906_v56 = vsel %vm661_vm3, 1.0, %v3160_v40  ;;  %v2408_v12 = vpop.f32.mrf.mxu1 }
 0x108   :  { %v1234_v57 = vadd.f32 %v2357_v46, %v1233_v54  ;;  %1524 = vrot.lane.b32.xlu1 %v1906_v56, %s2324_s0  ;;  %vm659_vm5 = vcmp.gt.f32.partialorder %v2374_v55, 0.0  ;;  %3282 = vst [vmem:[#allocation16_spill] sm:$0xff] %v2408_v12 }
 0x109   :  { %v2381_v58 = vpop.f32.mrf.mxu0  ;;  %v1904_v59 = vsel %vm659_vm5, 1.0, %v3160_v40  ;;  %v2419_v19 = vpop.f32.mrf.mxu1 }
 0x10a   :  { %v1235_v62 = vadd.f32 %v1234_v57, %v2374_v55  ;;  %vm662_vm6 = vcmp.gt.f32.partialorder %v2381_v58, 0.0  ;;  %1518 = vrot.lane.b32.xlu0 %v1903_v49, %s2324_s0  ;;  %3283 = vst [vmem:[#allocation17_spill] sm:$0xff] %v2419_v19 }
 0x10b   :  { %v2390_v63 = vpop.f32.mrf.mxu0  ;;  %v1907_v1 = vsel %vm662_vm6, 1.0, %v3160_v40  ;;  %v2431_v24 = vpop.f32.mrf.mxu1 }
 0x10c   :  { %v1236_v2 = vadd.f32 %v1235_v62, %v2390_v63  ;;  %1520 = vrot.lane.b32.xlu1 %v1904_v59, %s2324_s0  ;;  %vm660_vm7 = vcmp.gt.f32.partialorder %v2390_v63, 0.0  ;;  %v2127_v7 = vpack.i.bf16 %v1907_v1, %v1906_v56  ;;  %3284 = vst [vmem:[#allocation18_spill] sm:$0xff] %v2431_v24 }
 0x10d   :  { %v2397_v4 = vpop.f32.mrf.mxu0  ;;  %v1905_v8 = vsel %vm660_vm7, 1.0, %v3160_v40  ;;  %v2445_v32 = vpop.f32.mrf.mxu1 }
 0x10e   :  { %v1237_v6 = vadd.f32 %v2367_v52, %v1236_v2  ;;  %2117 = vperm.xlu0 %2110, %v2116_v3   ;;  %v2132_v13 = vpack.i.bf16 %v1905_v8, %v1904_v59  ;;  %vm665_vm8 = vcmp.gt.f32.partialorder %v2397_v4, 0.0  ;;  %3286 = vst [vmem:[#allocation20_spill] sm:$0xff] %v2445_v32 }
 0x10f   :  { %v2403_v9 = vpop.f32.mrf.mxu0  ;;  %v1910_v18 = vsel %vm665_vm8, 1.0, %v3160_v40  ;;  %v2456_v41 = vpop.f32.mrf.mxu1 }
 0x110   :  { %v1238_v10 = vadd.f32 %v2381_v58, %v1237_v6  ;;  %2128 = vperm.xlu1 %2126, %v2127_v7   ;;  %vm663_vm9 = vcmp.gt.f32.partialorder %v2403_v9, 0.0  ;;  %3289 = vst [vmem:[#allocation23_spill] sm:$0xff] %v2456_v41 }
 0x111   :  { %v2406_v11 = vpop.f32.mrf.mxu0  ;;  %v1908_v27 = vsel %vm663_vm9, 1.0, %v3160_v40  ;;  %v2468_v54 = vpop.f32.mrf.mxu1 }
 0x112   :  { %v1239_v14 = vadd.f32 %v1238_v10, %v2403_v9  ;;  %2122 = vrot.lane.b32.xlu0 %v2116_v3, %s2324_s0  ;;  %vm666_vm10 = vcmp.gt.f32.partialorder %v2406_v11, 0.0  ;;  %3292 = vst [vmem:[#allocation26_spill] sm:$0xff] %v2468_v54 }
 0x113   :  { %v2413_v15 = vpop.f32.mrf.mxu0  ;;  %v1911_v28 = vsel %vm666_vm10, 1.0, %v3160_v40  ;;  %v2482_v2 = vpop.f32.mrf.mxu1 }
 0x114   :  { %v1240_v16 = vadd.f32 %v1239_v14, %v2413_v15  ;;  %2133 = vperm.xlu1 %2126, %v2132_v13   ;;  %vm664_vm11 = vcmp.gt.f32.partialorder %v2413_v15, 0.0  ;;  %v2137_v34 = vpack.i.bf16 %v1911_v28, %v1910_v18  ;;  %3295 = vst [vmem:[#allocation29_spill] sm:$0xff] %v2482_v2 }
 0x115   :  { %v2416_v17 = vpop.f32.mrf.mxu0  ;;  %v1909_v30 = vsel %vm664_vm11, 1.0, %v3160_v40 }
 0x116   :  { %v1241_v20 = vadd.f32 %v2397_v4, %v1240_v16  ;;  %1526 = vrot.lane.b32.xlu0 %v1907_v1, %s2324_s0  ;;  %vm669_vm12 = vcmp.gt.f32.partialorder %v2416_v17, 0.0  ;;  %v2142_v36 = vpack.i.bf16 %v1909_v30, %v1908_v27 }
 0x117   :  { %v2423_v21 = vpop.f32.mrf.mxu0  ;;  %v1914_v39 = vsel %vm669_vm12, 1.0, %v3160_v40 }
 0x118   :  { %v1242_v22 = vadd.f32 %v2406_v11, %v1241_v20  ;;  %1532 = vrot.lane.b32.xlu1 %v1910_v18, %s2324_s0  ;;  %vm667_vm13 = vcmp.gt.f32.partialorder %v2423_v21, 0.0 }
 0x119   :  { %v2429_v23 = vpop.f32.mrf.mxu0  ;;  %v1912_v59 = vsel %vm667_vm13, 1.0, %v3160_v40 }
 0x11a   :  { %v1243_v25 = vadd.f32 %v1242_v22, %v2423_v21  ;;  %1522 = vrot.lane.b32.xlu0 %v1905_v8, %s2324_s0  ;;  %vm670_vm14 = vcmp.gt.f32.partialorder %v2429_v23, 0.0 }
 0x11b   :  { %v2436_v26 = vpop.f32.mrf.mxu0  ;;  %v1915_v60 = vsel %vm670_vm14, 1.0, %v3160_v40 }
 0x11c   :  { %v1244_v29 = vadd.f32 %v1243_v25, %v2436_v26  ;;  %1528 = vrot.lane.b32.xlu1 %v1908_v27, %s2324_s0  ;;  %vm668_vm15 = vcmp.gt.f32.partialorder %v2436_v26, 0.0  ;;  %v2147_v6 = vpack.i.bf16 %v1915_v60, %v1914_v39  ;;  %v2509_v25 = vpop.f32.mrf.mxu1 }
 0x11d   :  { %v2443_v31 = vpop.f32.mrf.mxu0  ;;  %v1913_v0 = vsel %vm668_vm15, 1.0, %v3160_v40  ;;  %3298 = vst [vmem:[#allocation32_spill] sm:$0xff] %v2509_v25 }
 0x11e   :  { %3285 = vst [vmem:[#allocation19_spill] sm:$0xff] %v2443_v31  ;;  %v1245_v33 = vadd.f32 %v2416_v17, %v1244_v29  ;;  %1534 = vrot.lane.b32.xlu0 %v1911_v28, %s2324_s0  ;;  %v2152_v7 = vpack.i.bf16 %v1913_v0, %v1912_v59  ;;  %vm673_vm3 = vcmp.gt.f32.partialorder %v2443_v31, 0.0 }
 0x11f   :  { %v2450_v35 = vpop.f32.mrf.mxu0 }
 0x120   :  { %3287 = vst [vmem:[#allocation21_spill] sm:$0xff] %v2450_v35  ;;  %v1246_v37 = vadd.f32 %v2429_v23, %v1245_v33  ;;  %2138 = vperm.xlu1 %2126, %v2137_v34   ;;  %vm671_vm5 = vcmp.gt.f32.partialorder %v2450_v35, 0.0 }
 0x121   :  { %v2453_v38 = vpop.f32.mrf.mxu0 }
 0x122   :  { %3288 = vst [vmem:[#allocation22_spill] sm:$0xff] %v2453_v38  ;;  %v1247_v45 = vadd.f32 %v1246_v37, %v2450_v35  ;;  %2143 = vperm.xlu0 %2110, %v2142_v36   ;;  %vm674_vm7 = vcmp.gt.f32.partialorder %v2453_v38, 0.0  ;;  %v1916_v36 = vsel %vm671_vm5, 1.0, %v3160_v40  ;;  %vm693_vm5 = vcmp.gt.f32.partialorder %v2399_v5, 0.0 }
 0x123   :  { %v2459_v49 = vpop.f32.mrf.mxu0 }
 0x124   :  { %3290 = vst [vmem:[#allocation24_spill] sm:$0xff] %v2459_v49  ;;  %v1248_v50 = vadd.f32 %v1247_v45, %v2459_v49  ;;  %1540 = vrot.lane.b32.xlu1 %v1914_v39, %s2324_s0  ;;  %vm672_vm6 = vcmp.gt.f32.partialorder %v2459_v49, 0.0  ;;  %v2527_v39 = vpop.f32.mrf.mxu1 }
 0x125   :  { %v2465_v51 = vpop.f32.mrf.mxu0  ;;  %v1917_v37 = vsel %vm672_vm6, 1.0, %v3160_v40  ;;  %3301 = vst [vmem:[#allocation35_spill] sm:$0xff] %v2527_v39  ;;  %vm692_vm6 = vcmp.gt.f32.partialorder %v2431_v24, 0.0 }
 0x126   :  { %3291 = vst [vmem:[#allocation25_spill] sm:$0xff] %v2465_v51  ;;  %v1249_v56 = vadd.f32 %v2443_v31, %v1248_v50  ;;  %1530 = vrot.lane.b32.xlu0 %v1909_v30, %s2324_s0  ;;  %vm677_vm0 = vcmp.gt.f32.partialorder %v2465_v51, 0.0  ;;  %v1918_v30 = vsel %vm673_vm3, 1.0, %v3160_v40  ;;  %v1919_v50 = vsel %vm674_vm7, 1.0, %v3160_v40 }
 0x127   :  { %v2472_v57 = vpop.f32.mrf.mxu0  ;;  %v2491_v10 = vsel %vm677_vm0, 1.0, %v3160_v40  ;;  %vm687_vm0 = vcmp.gt.f32.partialorder %v2359_v47, 0.0  ;;  %vm691_vm3 = vcmp.gt.f32.partialorder %v2408_v12, 0.0  ;;  %vm695_vm7 = vcmp.gt.f32.partialorder %v2456_v41, 0.0 }
 0x128   :  { %3293 = vst [vmem:[#allocation27_spill] sm:$0xff] %v2472_v57  ;;  %v1250_v62 = vadd.f32 %v2453_v38, %v1249_v56  ;;  %1536 = vrot.lane.b32.xlu1 %v1912_v59, %s2324_s0  ;;  %vm675_vm1 = vcmp.gt.f32.partialorder %v2472_v57, 0.0 }
 0x129   :  { %v2480_v1 = vpop.f32.mrf.mxu0  ;;  %v2504_v20 = vsel %vm675_vm1, 1.0, %v3160_v40  ;;  %vm689_vm1 = vcmp.gt.f32.partialorder %v2350_v43, 0.0 }
 0x12a   :  { %3294 = vst [vmem:[#allocation28_spill] sm:$0xff] %v2480_v1  ;;  %v1251_v3 = vadd.f32 %v1250_v62, %v2472_v57  ;;  %1542 = vrot.lane.b32.xlu0 %v1915_v60, %s2324_s0  ;;  %vm678_vm2 = vcmp.gt.f32.partialorder %v2480_v1, 0.0 }
 0x12b   :  { %v2488_v8 = vpop.f32.mrf.mxu0  ;;  %v2494_v13 = vsel %vm678_vm2, 1.0, %v3160_v40  ;;  %vm688_vm2 = vcmp.gt.f32.partialorder %v2385_v61, 0.0 }
 0x12c   :  { %3296 = vst [vmem:[#allocation30_spill] sm:$0xff] %v2488_v8  ;;  %v1252_v14 = vadd.f32 %v1251_v3, %v2488_v8  ;;  %2148 = vperm.xlu1 %2126, %v2147_v6   ;;  %vm676_vm4 = vcmp.gt.f32.partialorder %v2488_v8, 0.0  ;;  %v2162_v3 = vpack.i.bf16 %v1917_v37, %v1916_v36 }
 0x12d   :  { %v2501_v18 = vpop.f32.mrf.mxu0  ;;  %v2507_v22 = vsel %vm676_vm4, 1.0, %v3160_v40  ;;  %vm690_vm4 = vcmp.gt.f32.partialorder %v2369_v53, 0.0 }
 0x12e   :  { %3297 = vst [vmem:[#allocation31_spill] sm:$0xff] %v2501_v18  ;;  %v1253_v27 = vadd.f32 %v2465_v51, %v1252_v14  ;;  %2153 = vperm.xlu0 %2110, %v2152_v7   ;;  %vm681_vm8 = vcmp.gt.f32.partialorder %v2501_v18, 0.0 }
 0x12f   :  { %v2516_v29 = vpop.f32.mrf.mxu0  ;;  %v2537_v59 = vsel %vm681_vm8, 1.0, %v3160_v40  ;;  %vm694_vm8 = vcmp.gt.f32.partialorder %v2419_v19, 0.0 }
 0x130   :  { %3299 = vst [vmem:[#allocation33_spill] sm:$0xff] %v2516_v29  ;;  %v1254_v33 = vadd.f32 %v2480_v1, %v1253_v27  ;;  %1548 = vrot.lane.b32.xlu1 %v1918_v30, %s2324_s0  ;;  %vm679_vm9 = vcmp.gt.f32.partialorder %v2516_v29, 0.0  ;;  %v2555_v27 = vpop.f32.mrf.mxu1 }
 0x131   :  { %v2523_v34 = vpop.f32.mrf.mxu0  ;;  %v2550_v7 = vsel %vm679_vm9, 1.0, %v3160_v40  ;;  %3304 = vst [vmem:[#allocation38_spill] sm:$0xff] %v2555_v27  ;;  %vm697_vm9 = vcmp.gt.f32.partialorder %v2445_v32, 0.0 }
 0x132   :  { %3300 = vst [vmem:[#allocation34_spill] sm:$0xff] %v2523_v34  ;;  %v1255_v45 = vadd.f32 %v1254_v33, %v2516_v29  ;;  %1538 = vrot.lane.b32.xlu0 %v1913_v0, %s2324_s0  ;;  %vm682_vm10 = vcmp.gt.f32.partialorder %v2523_v34, 0.0  ;;  %v2157_v33 = vpack.i.bf16 %v1919_v50, %v1918_v30 }
 0x133   :  { %v2534_v56 = vpop.f32.mrf.mxu0  ;;  %v2540_v60 = vsel %vm682_vm10, 1.0, %v3160_v40  ;;  %vm696_vm10 = vcmp.gt.f32.partialorder %v2482_v2, 0.0 }
 0x134   :  { %3302 = vst [vmem:[#allocation36_spill] sm:$0xff] %v2534_v56  ;;  %v1256_v62 = vadd.f32 %v1255_v45, %v2534_v56  ;;  %1544 = vrot.lane.b32.xlu1 %v1916_v36, %s2324_s0  ;;  %vm680_vm11 = vcmp.gt.f32.partialorder %v2534_v56, 0.0 }
 0x135   :  { %v2547_v6 = vpop.f32.mrf.mxu0  ;;  %v2553_v14 = vsel %vm680_vm11, 1.0, %v3160_v40  ;;  %v2566_v40 = vpop.f32.mrf.mxu1  ;;  %vm699_vm11 = vcmp.gt.f32.partialorder %v2527_v39, 0.0 }
 0x136   :  { %3303 = vst [vmem:[#allocation37_spill] sm:$0xff] %v2547_v6  ;;  %v1257_v45 = vadd.f32 %v2501_v18, %v1256_v62  ;;  %2163 = vperm.xlu0 %2110, %v2162_v3   ;;  %vm685_vm12 = vcmp.gt.f32.partialorder %v2547_v6, 0.0  ;;  %3307 = vst [vmem:[#allocation41_spill] sm:$0xff] %v2566_v40  ;;  %v3309_v3 = vmov 0.0  }
 0x137   :  { %v2560_v16 = vpop.f32.mrf.mxu0 }
 0x138   :  { %3305 = vst [vmem:[#allocation39_spill] sm:$0xff] %v2560_v16  ;;  %2158 = vperm.xlu1 %2126, %v2157_v33   ;;  %v1258_v0 = vadd.f32 %v2523_v34, %v1257_v45  ;;  %vm683_vm13 = vcmp.gt.f32.partialorder %v2560_v16, 0.0  ;;  %v2575_v33 = vsel %vm685_vm12, 1.0, %v3309_v3  ;;  %v2592_v34 = vpop.f32.mrf.mxu1  ;;  %vm698_vm12 = vcmp.gt.f32.partialorder %v2468_v54, 0.0 }
 0x139   :  { %v2564_v28 = vpop.f32.mrf.mxu0  ;;  %3310 = vst [vmem:[#allocation43_spill] sm:$0xff] %v2592_v34 }
 0x13a   :  { %3306 = vst [vmem:[#allocation40_spill] sm:$0xff] %v2564_v28  ;;  %1546 = vrot.lane.b32.xlu0 %v1917_v37, %s2324_s0  ;;  %v1259_v30 = vadd.f32 %v1258_v0, %v2560_v16  ;;  %vm686_vm14 = vcmp.gt.f32.partialorder %v2564_v28, 0.0  ;;  %v2587_v0 = vsel %vm683_vm13, 1.0, %v3309_v3  ;;  %v2601_v37 = vpop.f32.mrf.mxu1  ;;  %vm701_vm13 = vcmp.gt.f32.partialorder %v2509_v25, 0.0 }
 0x13b   :  { %v2572_v62 = vpop.f32.mrf.mxu0  ;;  %v2578_v45 = vsel %vm686_vm14, 1.0, %v3309_v3  ;;  %3311 = vst [vmem:[#allocation44_spill] sm:$0xff] %v2601_v37  ;;  %vm700_vm14 = vcmp.gt.f32.partialorder %v2566_v40, 0.0 }
 0x13c   :  { %3308 = vst [vmem:[#allocation42_spill] sm:$0xff] %v2572_v62  ;;  %v1260_v36 = vadd.f32 %v1259_v30, %v2572_v62  ;;  %1552 = vrot.lane.b32.xlu1 %v2504_v20, %s2324_s0  ;;  %vm684_vm15 = vcmp.gt.f32.partialorder %v2572_v62, 0.0 }
 0x13d   :  { %v2590_v16 = vsel %vm684_vm15, 1.0, %v3309_v3  ;;  %vm703_vm15 = vcmp.gt.f32.partialorder %v2601_v37, 0.0 }
 0x13e   :  { %v1261_v18 = vadd.f32 %v2547_v6, %v1260_v36  ;;  %1550 = vrot.lane.b32.xlu0 %v1919_v50, %s2324_s0  ;;  %v2609_v50 = vpop.f32.mrf.mxu1 }
 0x13f   :  { %3312 = vst [vmem:[#allocation45_spill] sm:$0xff] %v2609_v50 }
 0x140   :  { %v1262_v62 = vadd.f32 %v2564_v28, %v1261_v18  ;;  %1556 = vrot.lane.b32.xlu1 %v2491_v10, %s2324_s0 }
 0x142   :  { %v1263_v56 = vadd.f32 %v1262_v62, %v2359_v47  ;;  %1554 = vrot.lane.b32.xlu0 %v2507_v22, %s2324_s0  ;;  %v2617_v62 = vpop.f32.mrf.mxu1 }
 0x143   :  { %3313 = vst [vmem:[#allocation46_spill] sm:$0xff] %v2617_v62 }
 0x144   :  { %v1264_v29 = vadd.f32 %v1263_v56, %v2385_v61  ;;  %1560 = vrot.lane.b32.xlu1 %v2550_v7, %s2324_s0 }
 0x146   :  { %v1265_v36 = vadd.f32 %v2350_v43, %v1264_v29  ;;  %1558 = vrot.lane.b32.xlu0 %v2494_v13, %s2324_s0  ;;  %v2625_v29 = vpop.f32.mrf.mxu1  ;;  %v2664_v43 = vsel %vm691_vm3, 1.0, %v3309_v3 }
 0x147   :  { %3314 = vst [vmem:[#allocation47_spill] sm:$0xff] %v2625_v29 }
 0x148   :  { %v1266_v18 = vadd.f32 %v2369_v53, %v1265_v36  ;;  %1564 = vrot.lane.b32.xlu1 %v2537_v59, %s2324_s0  ;;  %v2680_v53 = vsel %vm693_vm5, 1.0, %v3309_v3  ;;  %vm709_vm5 = vcmp.gt.f32.partialorder %v2625_v29, 0.0 }
 0x14a   :  { %v1267_v30 = vadd.f32 %v1266_v18, %v2408_v12  ;;  %1562 = vrot.lane.b32.xlu0 %v2553_v14, %s2324_s0  ;;  %v2635_v18 = vsel %vm687_vm0, 1.0, %v3309_v3  ;;  %v2673_v12 = vsel %vm690_vm4, 1.0, %v3309_v3  ;;  %vm702_vm0 = vcmp.gt.f32.partialorder %v2555_v27, 0.0 }
 0x14b   :  { %vm706_vm4 = vcmp.gt.f32.partialorder %v2609_v50, 0.0 }
 0x14c   :  { %v1268_v56 = vadd.f32 %v1267_v30, %v2431_v24  ;;  %1568 = vrot.lane.b32.xlu1 %v2587_v0, %s2324_s0  ;;  %v2637_v30 = vpop.f32.mrf.mxu1  ;;  %v2696_v24 = vsel %vm695_vm7, 1.0, %v3309_v3 }
 0x14d   :  { %3315 = vst [vmem:[#allocation48_spill] sm:$0xff] %v2637_v30  ;;  %3319 = vst [vmem:[#allocation52_spill] sm:$0xff] %v2696_v24  ;;  %vm707_vm3 = vcmp.gt.f32.partialorder %v2637_v30, 0.0 }
 0x14e   :  { %v1269_v28 = vadd.f32 %v2399_v5, %v1268_v56  ;;  %1566 = vrot.lane.b32.xlu0 %v2540_v60, %s2324_s0  ;;  %v2650_v47 = vpop.f32.mrf.mxu1  ;;  %v2689_v5 = vsel %vm692_vm6, 1.0, %v3309_v3 }
 0x14f   :  { %3316 = vst [vmem:[#allocation49_spill] sm:$0xff] %v2650_v47 }
 0x150   :  { %v1270_v36 = vadd.f32 %v2419_v19, %v1269_v28  ;;  %1572 = vrot.lane.b32.xlu1 %v2575_v33, %s2324_s0  ;;  %v2648_v28 = vsel %vm689_vm1, 1.0, %v3309_v3  ;;  %v2666_v61 = vpop.f32.mrf.mxu1  ;;  %v2712_v19 = vsel %vm697_vm9, 1.0, %v3309_v3  ;;  %vm705_vm1 = vcmp.gt.f32.partialorder %v2592_v34, 0.0 }
 0x151   :  { %3317 = vst [vmem:[#allocation50_spill] sm:$0xff] %v2666_v61  ;;  %3321 = vst [vmem:[#allocation54_spill] sm:$0xff] %v2712_v19  ;;  %vm708_vm6 = vcmp.gt.f32.partialorder %v2666_v61, 0.0 }
 0x152   :  { %v1271_v6 = vadd.f32 %v1270_v36, %v2456_v41  ;;  %1570 = vrot.lane.b32.xlu0 %v2590_v16, %s2324_s0  ;;  %v2657_v36 = vsel %vm688_vm2, 1.0, %v3309_v3  ;;  %v2682_v51 = vpop.f32.mrf.mxu1  ;;  %v2705_v41 = vsel %vm694_vm8, 1.0, %v3309_v3  ;;  %vm704_vm2 = vcmp.gt.f32.partialorder %v2617_v62, 0.0 }
 0x153   :  { %3318 = vst [vmem:[#allocation51_spill] sm:$0xff] %v2682_v51  ;;  %vm710_vm8 = vcmp.gt.f32.partialorder %v2650_v47, 0.0  ;;  %vm713_vm9 = vcmp.gt.f32.partialorder %v2682_v51, 0.0 }
 0x154   :  { %v1272_v56 = vadd.f32 %v1271_v6, %v2482_v2  ;;  %1576 = vrot.lane.b32.xlu1 %v2635_v18, %s2324_s0  ;;  %v2698_v8 = vpop.f32.mrf.mxu1  ;;  %v2728_v2 = vsel %vm699_vm11, 1.0, %v3309_v3 }
 0x155   :  { %3320 = vst [vmem:[#allocation53_spill] sm:$0xff] %v2698_v8  ;;  %3324 = vst [vmem:[#allocation57_spill] sm:$0xff] %v2728_v2  ;;  %vm711_vm7 = vcmp.gt.f32.partialorder %v2698_v8, 0.0 }
 0x156   :  { %v1273_v1 = vadd.f32 %v2445_v32, %v1272_v56  ;;  %1574 = vrot.lane.b32.xlu0 %v2578_v45, %s2324_s0  ;;  %v2714_v57 = vpop.f32.mrf.mxu1  ;;  %v2721_v32 = vsel %vm696_vm10, 1.0, %v3309_v3 }
 0x157   :  { %3322 = vst [vmem:[#allocation55_spill] sm:$0xff] %v2714_v57  ;;  %3323 = vst [vmem:[#allocation56_spill] sm:$0xff] %v2721_v32 }
 0x158   :  { %v1274_v6 = vadd.f32 %v2468_v54, %v1273_v1  ;;  %1580 = vrot.lane.b32.xlu1 %v2648_v28, %s2324_s0  ;;  %v2730_v38 = vpop.f32.mrf.mxu1  ;;  %v2744_v54 = vsel %vm701_vm13, 1.0, %v3309_v3 }
 0x159   :  { %3325 = vst [vmem:[#allocation58_spill] sm:$0xff] %v2730_v38  ;;  %3327 = vst [vmem:[#allocation60_spill] sm:$0xff] %v2744_v54  ;;  %vm712_vm10 = vcmp.gt.f32.partialorder %v2730_v38, 0.0 }
 0x15a   :  { %v1275_v56 = vadd.f32 %v1274_v6, %v2527_v39  ;;  %1578 = vrot.lane.b32.xlu0 %v2657_v36, %s2324_s0  ;;  %v2737_v39 = vsel %vm698_vm12, 1.0, %v3309_v3  ;;  %vm714_vm12 = vcmp.gt.f32.partialorder %v2714_v57, 0.0 }
 0x15b   :  { %3326 = vst [vmem:[#allocation59_spill] sm:$0xff] %v2737_v39 }
 0x15c   :  { %v1276_v1 = vadd.f32 %v1275_v56, %v2566_v40  ;;  %1584 = vrot.lane.b32.xlu1 %v2664_v43, %s2324_s0  ;;  %v2760_v40 = vsel %vm703_vm15, 1.0, %v3309_v3  ;;  %vm1704_vm15 = vcmask 7168  }
 0x15d   :  { %3330 = vst [vmem:[#allocation63_spill] sm:$0xff] %v2760_v40 }
 0x15e   :  { %v1277_v6 = vadd.f32 %v2509_v25, %v1276_v1  ;;  %1582 = vrot.lane.b32.xlu0 %v2673_v12, %s2324_s0  ;;  %v2753_v25 = vsel %vm700_vm14, 1.0, %v3309_v3 }
 0x15f   :  { %3329 = vst [vmem:[#allocation62_spill] sm:$0xff] %v2753_v25 }
 0x160   :  { %v1278_v56 = vadd.f32 %v2555_v27, %v1277_v6  ;;  %1588 = vrot.lane.b32.xlu1 %v2680_v53, %s2324_s0  ;;  %v2776_v27 = vsel %vm705_vm1, 1.0, %v3309_v3 }
 0x161   :  { %3333 = vst [vmem:[#allocation66_spill] sm:$0xff] %v2776_v27 }
 0x162   :  { %v1279_v1 = vadd.f32 %v1278_v56, %v2601_v37  ;;  %1586 = vrot.lane.b32.xlu0 %v2689_v5, %s2324_s0  ;;  %v2769_v37 = vsel %vm702_vm0, 1.0, %v3309_v3 }
 0x163   :  { %3332 = vst [vmem:[#allocation65_spill] sm:$0xff] %v2769_v37 }
 0x164   :  { %v1280_v6 = vadd.f32 %v1279_v1, %v2617_v62  ;;  %1592 = vrot.lane.b32.xlu1 %v2696_v24, %s2324_s0 }
 0x166   :  { %v1281_v56 = vadd.f32 %v2592_v34, %v1280_v6  ;;  %1590 = vrot.lane.b32.xlu0 %v2705_v41, %s2324_s0  ;;  %v2785_v34 = vsel %vm704_vm2, 1.0, %v3309_v3 }
 0x167   :  { %3334 = vst [vmem:[#allocation67_spill] sm:$0xff] %v2785_v34 }
 0x168   :  { %v1282_v1 = vadd.f32 %v2609_v50, %v1281_v56  ;;  %1596 = vrot.lane.b32.xlu1 %v2712_v19, %s2324_s0  ;;  %v2746_v19 = vpop.f32.mrf.mxu1  ;;  %v2810_v50 = vsel %vm709_vm5, 1.0, %v3309_v3 }
 0x169   :  { %3328 = vst [vmem:[#allocation61_spill] sm:$0xff] %v2746_v19  ;;  %3338 = vst [vmem:[#allocation71_spill] sm:$0xff] %v2810_v50  ;;  %vm717_vm13 = vcmp.gt.f32.partialorder %v2746_v19, 0.0 }
 0x16a   :  { %v1283_v6 = vadd.f32 %v1282_v1, %v2637_v30  ;;  %1594 = vrot.lane.b32.xlu0 %v2721_v32, %s2324_s0  ;;  %v2801_v30 = vsel %vm706_vm4, 1.0, %v3309_v3  ;;  %v2870_v31 = vsel %vm717_vm13, 1.0, %v3309_v3 }
 0x16b   :  { %3337 = vst [vmem:[#allocation70_spill] sm:$0xff] %v2801_v30 }
 0x16c   :  { %v1284_v56 = vadd.f32 %v1283_v6, %v2666_v61  ;;  %1600 = vrot.lane.b32.xlu1 %v2728_v2, %s2324_s0  ;;  %v2762_v2 = vpop.f32.mrf.mxu1 }
 0x16d   :  { %3331 = vst [vmem:[#allocation64_spill] sm:$0xff] %v2762_v2  ;;  %vm715_vm11 = vcmp.gt.f32.partialorder %v2762_v2, 0.0 }
 0x16e   :  { %v1285_v1 = vadd.f32 %v2625_v29, %v1284_v56  ;;  %1598 = vrot.lane.b32.xlu0 %v2737_v39, %s2324_s0 }
 0x170   :  { %v1286_v6 = vadd.f32 %v2650_v47, %v1285_v1  ;;  %1604 = vrot.lane.b32.xlu1 %v2744_v54, %s2324_s0  ;;  %v2778_v54 = vpop.f32.mrf.mxu1 }
 0x171   :  { %vm718_vm0 = vcmp.gt.f32.partialorder %v2778_v54, 0.0 }
 0x172   :  { %v1287_v56 = vadd.f32 %v1286_v6, %v2698_v8  ;;  %1602 = vrot.lane.b32.xlu0 %v2753_v25, %s2324_s0  ;;  %v2791_v62 = vpop.f32.mrf.mxu1  ;;  %v2832_v8 = vsel %vm710_vm8, 1.0, %v3309_v3 }
 0x173   :  { %3335 = vst [vmem:[#allocation68_spill] sm:$0xff] %v2791_v62  ;;  %3341 = vst [vmem:[#allocation74_spill] sm:$0xff] %v2832_v8  ;;  %vm716_vm14 = vcmp.gt.f32.partialorder %v2791_v62, 0.0 }
 0x174   :  { %v1288_v1 = vadd.f32 %v1287_v56, %v2730_v38  ;;  %1608 = vrot.lane.b32.xlu1 %v2760_v40, %s2324_s0  ;;  %v2794_v40 = vsel %vm707_vm3, 1.0, %v3309_v3 }
 0x175   :  { %3336 = vst [vmem:[#allocation69_spill] sm:$0xff] %v2794_v40 }
 0x176   :  { %v1289_v6 = vadd.f32 %v2682_v51, %v1288_v1  ;;  %1606 = vrot.lane.b32.xlu0 %v2769_v37, %s2324_s0  ;;  %v2852_v37 = vsel %vm715_vm11, 1.0, %v3309_v3 }
 0x177   :  { %3344 = vst [vmem:[#allocation77_spill] sm:$0xff] %v2852_v37 }
 0x178   :  { %1612 = vrot.lane.b32.xlu1 %v2776_v27, %s2324_s0  ;;  %v1290_v56 = vadd.f32 %v2714_v57, %v1289_v6  ;;  %v2807_v6 = vpop.permute.xlu1 %1516 }
 0x17a   :  { %1610 = vrot.lane.b32.xlu0 %v2785_v34, %s2324_s0  ;;  %v1291_v1 = vadd.f32 %v1290_v56, %v2762_v2  ;;  %v2817_v56 = vsel %vm708_vm6, 1.0, %v3309_v3 }
 0x17b   :  { %3339 = vst [vmem:[#allocation72_spill] sm:$0xff] %v2817_v56 }
 0x17c   :  { %v1292_v27 = vadd.f32 %v1291_v1, %v2791_v62  ;;  %1616 = vrot.lane.b32.xlu1 %v2794_v40, %s2324_s0  ;;  %v2823_v29 = vpop.permute.xlu1 %1524 }
 0x17e   :  { %v1293_v34 = vadd.f32 %v2746_v19, %v1292_v27  ;;  %1614 = vrot.lane.b32.xlu0 %v2801_v30, %s2324_s0  ;;  %v2826_v27 = vsel %vm711_vm7, 1.0, %v3309_v3 }
 0x17f   :  { %3340 = vst [vmem:[#allocation73_spill] sm:$0xff] %v2826_v27 }
 0x180   :  { %v1294_v1 = vadd.f32 %v2778_v54, %v1293_v34  ;;  %1620 = vrot.lane.b32.xlu1 %v2810_v50, %s2324_s0  ;;  %v2838_v50 = vsel %vm713_vm9, 1.0, %v3309_v3  ;;  %v2843_v51 = vpop.permute.xlu1 %1520 }
 0x181   :  { %v2113_v61 = vpop.permute.xlu0 %2112  ;;  %3342 = vst [vmem:[#allocation75_spill] sm:$0xff] %v2838_v50 }
 0x182   :  { %v1295_v40 = vrot.slane %v1294_v1, 4  ;;  %1618 = vrot.lane.b32.xlu0 %v2817_v56, %s2324_s0  ;;  %v2846_v56 = vsel %vm712_vm10, 1.0, %v3309_v3  ;;  %v2115_v38 = vunpack.i.h.bf16 %v2113_v61 }
 0x183   :  { %3343 = vst [vmem:[#allocation76_spill] sm:$0xff] %v2846_v56 }
 0x184   :  { %v1296_v34 = vadd.f32 %v1295_v40, %v1294_v1  ;;  %1624 = vrot.lane.b32.xlu1 %v2826_v27, %s2324_s0  ;;  %v2114_v1 = vunpack.i.l.bf16 %v2113_v61  ;;  %v1170_v19 = vmul.f32 %v2115_v38, %v2357_v46  ;;  %v2879_v38 = vsel %vm716_vm14, 1.0, %v3309_v3 }
 0x185   :  { %v1519_v47 = vpop.permute.xlu0 %1518 }
 0x186   :  { %v1297_v30 = vrot.slane %v1296_v34, 2  ;;  %1622 = vrot.lane.b32.xlu0 %v2832_v8, %s2324_s0  ;;  %v1169_v57 = vmul.f32 %v2114_v1, %v2348_v42  ;;  %v1379_v62 = vmul.f32 %v2357_v46, %v1170_v19 }
 0x188   :  { %v1298_v40 = vadd.f32 %v1297_v30, %v1296_v34  ;;  %1628 = vrot.lane.b32.xlu1 %v2838_v50, %s2324_s0  ;;  %v1231_v30 = vld [vmem:[#allocation7] sm:$0x1]  ;;  %v2860_v50 = vsel %vm714_vm12, 1.0, %v3309_v3 }
 0x189   :  { %v2118_v27 = vpop.permute.xlu0 %2117  ;;  %3345 = vst [vmem:[#allocation78_spill] sm:$0xff] %v2860_v50 }
 0x18a   :  { %v1299_v8 = vrot.slane %v1298_v40, 1  ;;  %v2120_v25 = vunpack.i.h.bf16 %v2118_v27  ;;  %v2119_v2 = vunpack.i.l.bf16 %v2118_v27  ;;  %1626 = vrot.lane.b32.xlu0 %v2846_v56, %s2324_s0 }
 0x18b   :  { %v2857_v34 = vpop.permute.xlu1 %2128 }
 0x18c   :  { %v1300_v61 = vadd.f32 %v1299_v8, %v1298_v40  ;;  %v1168_v39 = vmul.f32 %v2120_v25, %v2362_v48  ;;  %v1167_v27 = vmul.f32 %v2119_v2, %v2353_v44  ;;  %1632 = vrot.lane.b32.xlu1 %v2852_v37, %s2324_s0 }
 0x18d   :  { %v2123_v56 = vpop.permute.xlu0 %2122 }
 0x18e   :  { %v1301_v32 = vadd.f32 %v1300_v61, %v1231_v30  ;;  %v1377_v35 = vmul.f32 %v1168_v39, %v2362_v48  ;;  %v1304_v8 = vadd.f32 %v1168_v39, %v1167_v27  ;;  %v1376_v40 = vmul.f32 %v1167_v27, %v2353_v44  ;;  %1630 = vrot.lane.b32.xlu0 %v2860_v50, %s2324_s0 }
 0x18f   :  { %v2125_v2 = vunpack.i.h.bf16 %v2123_v56  ;;  %v2124_v25 = vunpack.i.l.bf16 %v2123_v56  ;;  %v2134_v1 = vpop.permute.xlu1 %2133  ;;  %v1378_v30 = vmul.f32 %v2348_v42, %v1169_v57  ;;  %v1708_v42 = vsel %vm1704_vm15, %v2807_v6, 0.0 }
 0x190   :  { %1302 = vst [vmem:[#allocation7] sm:$0x1] %v1301_v32  ;;  %v1305_v48 = vadd.f32 %v1304_v8, %v1169_v57  ;;  %v1440_v39 = vadd.f32 %v1377_v35, %v1376_v40  ;;  %v2135_v61 = vunpack.i.l.bf16 %v2134_v1  ;;  %1636 = vrot.lane.b32.xlu1 %v2870_v31, %s2324_s0  ;;  %v2136_v27 = vunpack.i.h.bf16 %v2134_v1 }
 0x191   :  { %v1706_v44 = vsel %vm1704_vm15, %v2125_v2, 0.0  ;;  %v1705_v56 = vsel %vm1704_vm15, %v2124_v25, 0.0  ;;  %v1527_v50 = vpop.permute.xlu0 %1526  ;;  %v2896_v57 = vsel %vm718_vm0, 1.0, %v3309_v3  ;;  %v1710_v8 = vsel %vm1704_vm15, %v1519_v47, 0.0 }
 0x192   :  { %v1306_v37 = vadd.f32 %v1305_v48, %v1170_v19  ;;  %v1441_v49 = vadd.f32 %v1440_v39, %v1378_v30  ;;  %v1707_v24 = vadd.f32 %v1706_v44, %v1705_v56  ;;  %1634 = vrot.lane.b32.xlu0 %v2879_v38, %s2324_s0  ;;  %v1171_v32 = vmul.f32 %v2135_v61, %v2374_v55 }
 0x193   :  { %v1533_v35 = vpop.permute.xlu1 %1532  ;;  %v3346_v40 = vpack.i.bf16 %v2507_v22, %v2504_v20  ;;  %v2130_v2 = vunpack.i.l.bf16 %v2857_v34  ;;  %v1172_v6 = vmul.f32 %v2136_v27, %v2390_v63  ;;  %v1712_v47 = vsel %vm1704_vm15, %v2843_v51, 0.0 }
 0x194   :  { %v1442_v46 = vadd.f32 %v1441_v49, %v1379_v62  ;;  %v1709_v19 = vadd.f32 %v1708_v42, %v1707_v24  ;;  %v1307_v25 = vadd.f32 %v1306_v37, %v1171_v32  ;;  %v1380_v1 = vmul.f32 %v1171_v32, %v2374_v55 }
 0x195   :  { %2168 = vperm.xlu1 %2126, %v3346_v40   ;;  %v1523_v30 = vpop.permute.xlu0 %1522  ;;  %v2131_v20 = vunpack.i.h.bf16 %v2857_v34  ;;  %v3347_v3 = vpack.i.bf16 %v2553_v14, %v2550_v7  ;;  %v1173_v37 = vmul.f32 %v2130_v2, %v2367_v52  ;;  %v1381_v55 = vmul.f32 %v1172_v6, %v2390_v63 }
 0x196   :  { %v1711_v48 = vadd.f32 %v1710_v8, %v1709_v19  ;;  %1638 = vrot.lane.b32.xlu0 %v2896_v57, %s2324_s0  ;;  %v1443_v24 = vadd.f32 %v1442_v46, %v1380_v1  ;;  %v1308_v62 = vadd.f32 %v1307_v25, %v1172_v6  ;;  %v1714_v39 = vsel %vm1704_vm15, %v1523_v30, 0.0 }
 0x197   :  { %v1529_v49 = vpop.permute.xlu1 %1528  ;;  %v2192_v51 = vpack.i.bf16 %v2657_v36, %v2635_v18  ;;  %v3348_v34 = vpack.i.bf16 %v2494_v13, %v2491_v10  ;;  %v1716_v7 = vsel %vm1704_vm15, %v2823_v29, 0.0  ;;  %v1174_v27 = vmul.f32 %v2131_v20, %v2381_v58 }
 0x198   :  { %v1713_v22 = vadd.f32 %v1712_v47, %v1711_v48  ;;  %v1444_v14 = vadd.f32 %v1443_v24, %v1381_v55  ;;  %v1382_v42 = vmul.f32 %v2367_v52, %v1173_v37  ;;  %v1309_v32 = vadd.f32 %v1308_v62, %v1173_v37 }
 0x199   :  { %2178 = vperm.xlu1 %2126, %v3347_v3   ;;  %v1535_v61 = vpop.permute.xlu0 %1534  ;;  %v1718_v8 = vsel %vm1704_vm15, %v1527_v50, 0.0  ;;  %v2202_v36 = vpack.i.bf16 %v2689_v5, %v2664_v43  ;;  %v3349_v29 = vpack.i.bf16 %v2540_v60, %v2537_v59  ;;  %v1383_v2 = vmul.f32 %v2381_v58, %v1174_v27 }
 0x19a   :  { %v1715_v44 = vadd.f32 %v1714_v39, %v1713_v22  ;;  %2173 = vperm.xlu0 %2110, %v3348_v34   ;;  %v1445_v46 = vadd.f32 %v1444_v14, %v1382_v42  ;;  %v1720_v52 = vsel %vm1704_vm15, %v1529_v49, 0.0  ;;  %v1310_v25 = vadd.f32 %v1309_v32, %v1174_v27 }
 0x19b   :  { %v2139_v56 = vpop.permute.xlu1 %2138  ;;  %v3350_v60 = vpack.i.bf16 %v2578_v45, %v2575_v33  ;;  %v2197_v20 = vpack.i.bf16 %v2673_v12, %v2648_v28  ;;  %v1724_v22 = vsel %vm1704_vm15, %v1533_v35, 0.0 }
 0x19c   :  { %v1717_v63 = vadd.f32 %v1716_v7, %v1715_v44  ;;  %v2140_v6 = vunpack.i.l.bf16 %v2139_v56  ;;  %v2141_v30 = vunpack.i.h.bf16 %v2139_v56  ;;  %v1446_v48 = vadd.f32 %v1445_v46, %v1383_v2 }
 0x19d   :  { %2193 = vperm.xlu1 %2126, %v2192_v51   ;;  %v2144_v18 = vpop.permute.xlu0 %2143  ;;  %v1726_v44 = vsel %vm1704_vm15, %v1535_v61, 0.0 }
 0x19e   :  { %v1719_v10 = vadd.f32 %v1718_v8, %v1717_v63  ;;  %v2146_v13 = vunpack.i.h.bf16 %v2144_v18  ;;  %2183 = vperm.xlu0 %2110, %v3349_v29   ;;  %v2145_v19 = vunpack.i.l.bf16 %v2144_v18  ;;  %v1177_v3 = vmul.f32 %v2140_v6, %v2397_v4 }
 0x19f   :  { %v1541_v40 = vpop.permute.xlu1 %1540 }
 0x1a0   :  { %v1721_v50 = vadd.f32 %v1720_v52, %v1719_v10  ;;  %v1176_v1 = vmul.f32 %v2146_v13, %v2413_v15  ;;  %v1175_v43 = vmul.f32 %v2145_v19, %v2403_v9  ;;  %v1386_v12 = vmul.f32 %v2397_v4, %v1177_v3 }
 0x1a1   :  { %2203 = vperm.xlu1 %2126, %v2202_v36   ;;  %v1531_v5 = vpop.permute.xlu0 %1530  ;;  %v1732_v52 = vsel %vm1704_vm15, %v1541_v40, 0.0 }
 0x1a2   :  { %v1722_v59 = vsel %vm1704_vm15, %v1531_v5, 0.0  ;;  %2188 = vperm.xlu0 %2110, %v3350_v60   ;;  %v1311_v58 = vadd.f32 %v1310_v25, %v1175_v43  ;;  %v1384_v47 = vmul.f32 %v1175_v43, %v2403_v9  ;;  %v1385_v37 = vmul.f32 %v1176_v1, %v2413_v15 }
 0x1a3   :  { %v1723_v24 = vadd.f32 %v1722_v59, %v1721_v50  ;;  %v1537_v49 = vpop.permute.xlu1 %1536  ;;  %v1178_v9 = vmul.f32 %v2141_v30, %v2406_v11  ;;  %v3352_v50 = vld [vmem:[#allocation52_spill] sm:$0xff] }
 0x1a4   :  { %v1312_v55 = vadd.f32 %v1311_v58, %v1176_v1  ;;  %v1447_v33 = vadd.f32 %v1446_v48, %v1384_v47  ;;  %v1728_v42 = vsel %vm1704_vm15, %v1537_v49, 0.0  ;;  %v3353_v49 = vld [vmem:[#allocation24_spill] sm:$0xff] }
 0x1a5   :  { %1039 = vperm.xlu1 %2126, %v2680_v53   ;;  %v1725_v45 = vadd.f32 %v1724_v22, %v1723_v24  ;;  %v1543_v62 = vpop.permute.xlu0 %1542  ;;  %v1387_v56 = vmul.f32 %v2406_v11, %v1178_v9  ;;  %v3354_v22 = vld [vmem:[#allocation21_spill] sm:$0xff] }
 0x1a6   :  { %2198 = vperm.xlu0 %2110, %v2197_v20   ;;  %v1448_v39 = vadd.f32 %v1447_v33, %v1385_v37  ;;  %v1313_v28 = vadd.f32 %v1312_v55, %v1177_v3  ;;  %v1734_v25 = vsel %vm1704_vm15, %v1543_v62, 0.0  ;;  %v3355_v37 = vld [vmem:[#allocation56_spill] sm:$0xff] }
 0x1a7   :  { %v2149_v51 = vpop.permute.xlu1 %2148  ;;  %v1727_v35 = vadd.f32 %v1726_v44, %v1725_v45 }
 0x1a8   :  { %v2150_v53 = vunpack.i.l.bf16 %v2149_v51  ;;  %v1449_v15 = vadd.f32 %v1448_v39, %v1386_v12  ;;  %v2151_v27 = vunpack.i.h.bf16 %v2149_v51  ;;  %v1314_v32 = vadd.f32 %v1313_v28, %v1178_v9  ;;  %v3356_v51 = vld [vmem:[#allocation19_spill] sm:$0xff] }
 0x1a9   :  { %1044 = vperm.xlu1 %2126, %v2705_v41   ;;  %v2154_v34 = vpop.permute.xlu0 %2153  ;;  %v3351_v41 = vpack.i.bf16 %v2590_v16, %v2587_v0  ;;  %v1729_v8 = vadd.f32 %v1728_v42, %v1727_v35 }
 0x1aa   :  { %v2156_v7 = vunpack.i.h.bf16 %v2154_v34  ;;  %v2155_v14 = vunpack.i.l.bf16 %v2154_v34  ;;  %v1181_v18 = vmul.f32 %v2150_v53, %v2416_v17  ;;  %v1450_v10 = vadd.f32 %v1449_v15, %v1387_v56  ;;  %v3357_v34 = vld [vmem:[#allocation22_spill] sm:$0xff] }
 0x1ab   :  { %v1549_v63 = vpop.permute.xlu1 %1548  ;;  %v1182_v46 = vmul.f32 %v2151_v27, %v2429_v23 }
 0x1ac   :  { %v1180_v61 = vmul.f32 %v2156_v7, %v2436_v26  ;;  %v1179_v4 = vmul.f32 %v2155_v14, %v2423_v21  ;;  %v1390_v1 = vmul.f32 %v2416_v17, %v1181_v18  ;;  %v3358_v14 = vld [vmem:[#allocation54_spill] sm:$0xff]  ;;  %v1740_v56 = vsel %vm1704_vm15, %v1549_v63, 0.0 }
 0x1ad   :  { %2208 = vperm.xlu1 %2126, %v3351_v41   ;;  %v1539_v36 = vpop.permute.xlu0 %1538  ;;  %v1391_v48 = vmul.f32 %v2429_v23, %v1182_v46 }
 0x1ae   :  { %v1315_v13 = vadd.f32 %v1314_v32, %v1179_v4  ;;  %v1388_v11 = vmul.f32 %v1179_v4, %v2423_v21  ;;  %v1730_v29 = vsel %vm1704_vm15, %v1539_v36, 0.0  ;;  %v1389_v6 = vmul.f32 %v1180_v61, %v2436_v26 }
 0x1af   :  { %v1731_v19 = vadd.f32 %v1730_v29, %v1729_v8  ;;  %v1545_v2 = vpop.permute.xlu1 %1544 }
 0x1b0   :  { %v1316_v16 = vadd.f32 %v1315_v13, %v1180_v61  ;;  %v1451_v0 = vadd.f32 %v1450_v10, %v1388_v11  ;;  %v1736_v40 = vsel %vm1704_vm15, %v1545_v2, 0.0  ;;  %v3359_v11 = vld [vmem:[#allocation59_spill] sm:$0xff] }
 0x1b1   :  { %1049 = vperm.xlu1 %2126, %v3352_v50   ;;  %v1733_v43 = vadd.f32 %v1732_v52, %v1731_v19  ;;  %v2164_v21 = vpop.permute.xlu0 %2163 }
 0x1b2   :  { %v1317_v5 = vadd.f32 %v1316_v16, %v1181_v18  ;;  %v1452_v30 = vadd.f32 %v1451_v0, %v1389_v6  ;;  %v2166_v59 = vunpack.i.h.bf16 %v2164_v21  ;;  %v2165_v60 = vunpack.i.l.bf16 %v2164_v21  ;;  %v3360_v16 = vld [vmem:[#allocation57_spill] sm:$0xff] }
 0x1b3   :  { %v1735_v58 = vadd.f32 %v1734_v25, %v1733_v43  ;;  %v2159_v26 = vpop.permute.xlu1 %2158 }
 0x1b4   :  { %v1453_v47 = vadd.f32 %v1452_v30, %v1390_v1  ;;  %v1318_v24 = vadd.f32 %v1317_v5, %v1182_v46  ;;  %v1184_v20 = vmul.f32 %v2166_v59, %v3353_v49  ;;  %v1183_v3 = vmul.f32 %v2165_v60, %v3354_v22  ;;  %v3361_v5 = vld [vmem:[#allocation62_spill] sm:$0xff] }
 0x1b5   :  { %1054 = vperm.xlu1 %2126, %v3355_v37   ;;  %v1737_v17 = vadd.f32 %v1736_v40, %v1735_v58  ;;  %v2161_v55 = vunpack.i.h.bf16 %v2159_v26  ;;  %v2160_v33 = vunpack.i.l.bf16 %v2159_v26  ;;  %v1547_v45 = vpop.permute.xlu0 %1546  ;;  %v3362_v26 = vld [vmem:[#allocation65_spill] sm:$0xff]  ;;  %v3363_v37 = vld [vmem:[#allocation63_spill] sm:$0xff] }
 0x1b6   :  { %v1454_v62 = vadd.f32 %v1453_v47, %v1391_v48  ;;  %v1319_v9 = vadd.f32 %v1318_v24, %v1183_v3  ;;  %v1392_v23 = vmul.f32 %v1183_v3, %v3354_v22  ;;  %v1393_v39 = vmul.f32 %v1184_v20, %v3353_v49 }
 0x1b7   :  { %v1185_v44 = vmul.f32 %v2160_v33, %v3356_v51  ;;  %v1738_v12 = vsel %vm1704_vm15, %v1547_v45, 0.0  ;;  %v1553_v28 = vpop.permute.xlu1 %1552  ;;  %v1186_v15 = vmul.f32 %v2161_v55, %v3357_v34 }
 0x1b8   :  { %v1320_v35 = vadd.f32 %v1319_v9, %v1184_v20  ;;  %v1455_v53 = vadd.f32 %v1454_v62, %v1392_v23  ;;  %v1739_v7 = vadd.f32 %v1738_v12, %v1737_v17  ;;  %v1744_v29 = vsel %vm1704_vm15, %v1553_v28, 0.0  ;;  %v3364_v23 = vld [vmem:[#allocation67_spill] sm:$0xff] }
 0x1b9   :  { %1059 = vperm.xlu1 %2126, %v3358_v14   ;;  %v1394_v27 = vmul.f32 %v3356_v51, %v1185_v44  ;;  %v1551_v42 = vpop.permute.xlu0 %1550  ;;  %v1395_v18 = vmul.f32 %v3357_v34, %v1186_v15 }
 0x1ba   :  { %v1456_v32 = vadd.f32 %v1455_v53, %v1393_v39  ;;  %v1321_v61 = vadd.f32 %v1320_v35, %v1185_v44  ;;  %v1741_v4 = vadd.f32 %v1740_v56, %v1739_v7  ;;  %v1742_v41 = vsel %vm1704_vm15, %v1551_v42, 0.0  ;;  %v3365_v53 = vld [vmem:[#allocation66_spill] sm:$0xff] }
 0x1bb   :  { %v1557_v8 = vpop.permute.xlu1 %1556  ;;  %v3366_v42 = vld [vmem:[#allocation70_spill] sm:$0xff] }
 0x1bc   :  { %v2981_v36 = vadd.f32 %v1321_v61, %v1186_v15  ;;  %v1457_v10 = vadd.f32 %v1456_v32, %v1394_v27  ;;  %v1743_v13 = vadd.f32 %v1742_v41, %v1741_v4  ;;  %v1748_v0 = vsel %vm1704_vm15, %v1557_v8, 0.0 }
 0x1bd   :  { %1064 = vperm.xlu1 %2126, %v3359_v11   ;;  %v1555_v63 = vpop.permute.xlu0 %1554 }
 0x1be   :  { %v2985_v46 = vadd.f32 %v1457_v10, %v1395_v18  ;;  %v1745_v19 = vadd.f32 %v1744_v29, %v1743_v13  ;;  %v1746_v2 = vsel %vm1704_vm15, %v1555_v63, 0.0  ;;  %v3367_v10 = vld [vmem:[#allocation69_spill] sm:$0xff] }
 0x1bf   :  { %v1561_v52 = vpop.permute.xlu1 %1560 }
 0x1c0   :  { %v1747_v6 = vadd.f32 %v1746_v2, %v1745_v19  ;;  %v1752_v30 = vsel %vm1704_vm15, %v1561_v52, 0.0  ;;  %v3368_v52 = vld [vmem:[#allocation71_spill] sm:$0xff] }
 0x1c1   :  { %1069 = vperm.xlu1 %2126, %v3360_v16   ;;  %v1559_v50 = vpop.permute.xlu0 %1558 }
 0x1c2   :  { %v1749_v25 = vadd.f32 %v1748_v0, %v1747_v6  ;;  %v1750_v1 = vsel %vm1704_vm15, %v1559_v50, 0.0 }
 0x1c3   :  { %v1565_v43 = vpop.permute.xlu1 %1564 }
 0x1c4   :  { %v1751_v21 = vadd.f32 %v1750_v1, %v1749_v25  ;;  %v1756_v47 = vsel %vm1704_vm15, %v1565_v43, 0.0  ;;  %v3369_v43 = vld [vmem:[#allocation73_spill] sm:$0xff] }
 0x1c5   :  { %1074 = vperm.xlu1 %2126, %v3361_v5   ;;  %v1563_v59 = vpop.permute.xlu0 %1562 }
 0x1c6   :  { %v1753_v60 = vadd.f32 %v1752_v30, %v1751_v21  ;;  %v1754_v48 = vsel %vm1704_vm15, %v1563_v59, 0.0 }
 0x1c7   :  { %v1569_v58 = vpop.permute.xlu1 %1568 }
 0x1c8   :  { %v1755_v40 = vadd.f32 %v1754_v48, %v1753_v60  ;;  %v1760_v17 = vsel %vm1704_vm15, %v1569_v58, 0.0  ;;  %v3370_v58 = vld [vmem:[#allocation75_spill] sm:$0xff] }
 0x1c9   :  { %1084 = vperm.xlu1 %2126, %v3362_v26   ;;  %v1567_v24 = vpop.permute.xlu0 %1566 }
 0x1ca   :  { %v1757_v49 = vadd.f32 %v1756_v47, %v1755_v40  ;;  %v1758_v20 = vsel %vm1704_vm15, %v1567_v24, 0.0 }
 0x1cb   :  { %v1573_v22 = vpop.permute.xlu1 %1572 }
 0x1cc   :  { %v1759_v3 = vadd.f32 %v1758_v20, %v1757_v49  ;;  %v1764_v39 = vsel %vm1704_vm15, %v1573_v22, 0.0  ;;  %v3371_v22 = vld [vmem:[#allocation77_spill] sm:$0xff] }
 0x1cd   :  { %1089 = vperm.xlu1 %2126, %v3363_v37   ;;  %v1571_v55 = vpop.permute.xlu0 %1570 }
 0x1ce   :  { %v1761_v33 = vadd.f32 %v1760_v17, %v1759_v3  ;;  %v1762_v45 = vsel %vm1704_vm15, %v1571_v55, 0.0 }
 0x1cf   :  { %v1577_v62 = vpop.permute.xlu1 %1576 }
 0x1d0   :  { %v1763_v9 = vadd.f32 %v1762_v45, %v1761_v33  ;;  %v1768_v34 = vsel %vm1704_vm15, %v1577_v62, 0.0 }
 0x1d1   :  { %1094 = vperm.xlu1 %2126, %v3364_v23   ;;  %v1575_v51 = vpop.permute.xlu0 %1574 }
 0x1d2   :  { %v1765_v44 = vadd.f32 %v1764_v39, %v1763_v9  ;;  %v1766_v12 = vsel %vm1704_vm15, %v1575_v51, 0.0 }
 0x1d3   :  { %v1581_v28 = vpop.permute.xlu1 %1580 }
 0x1d4   :  { %v1767_v35 = vadd.f32 %v1766_v12, %v1765_v44  ;;  %v1772_v32 = vsel %vm1704_vm15, %v1581_v28, 0.0 }
 0x1d5   :  { %1099 = vperm.xlu1 %2126, %v3365_v53   ;;  %v1579_v15 = vpop.permute.xlu0 %1578 }
 0x1d6   :  { %v1769_v7 = vadd.f32 %v1768_v34, %v1767_v35  ;;  %v1770_v14 = vsel %vm1704_vm15, %v1579_v15, 0.0 }
 0x1d7   :  { %v1585_v56 = vpop.permute.xlu1 %1584 }
 0x1d8   :  { %v1771_v27 = vadd.f32 %v1770_v14, %v1769_v7  ;;  %v1776_v13 = vsel %vm1704_vm15, %v1585_v56, 0.0 }
 0x1d9   :  { %1104 = vperm.xlu1 %2126, %v3366_v42   ;;  %v1583_v61 = vpop.permute.xlu0 %1582 }
 0x1da   :  { %v1773_v4 = vadd.f32 %v1772_v32, %v1771_v27  ;;  %v1774_v41 = vsel %vm1704_vm15, %v1583_v61, 0.0 }
 0x1db   :  { %v1589_v8 = vpop.permute.xlu1 %1588 }
 0x1dc   :  { %v1775_v18 = vadd.f32 %v1774_v41, %v1773_v4  ;;  %v1780_v6 = vsel %vm1704_vm15, %v1589_v8, 0.0 }
 0x1dd   :  { %1109 = vperm.xlu1 %2126, %v3367_v10   ;;  %v1587_v11 = vpop.permute.xlu0 %1586 }
 0x1de   :  { %v1777_v29 = vadd.f32 %v1776_v13, %v1775_v18  ;;  %v1778_v63 = vsel %vm1704_vm15, %v1587_v11, 0.0 }
 0x1df   :  { %v1593_v19 = vpop.permute.xlu1 %1592 }
 0x1e0   :  { %v1779_v2 = vadd.f32 %v1778_v63, %v1777_v29  ;;  %v1784_v21 = vsel %vm1704_vm15, %v1593_v19, 0.0 }
 0x1e1   :  { %1119 = vperm.xlu1 %2126, %v3368_v52   ;;  %v1591_v16 = vpop.permute.xlu0 %1590 }
 0x1e2   :  { %v1781_v0 = vadd.f32 %v1780_v6, %v1779_v2  ;;  %v1782_v50 = vsel %vm1704_vm15, %v1591_v16, 0.0 }
 0x1e3   :  { %v1597_v25 = vpop.permute.xlu1 %1596 }
 0x1e4   :  { %v1783_v1 = vadd.f32 %v1782_v50, %v1781_v0  ;;  %v1788_v40 = vsel %vm1704_vm15, %v1597_v25, 0.0 }
 0x1e5   :  { %1129 = vperm.xlu1 %2126, %v3369_v43   ;;  %v1595_v5 = vpop.permute.xlu0 %1594 }
 0x1e6   :  { %v1785_v30 = vadd.f32 %v1784_v21, %v1783_v1  ;;  %v1786_v59 = vsel %vm1704_vm15, %v1595_v5, 0.0 }
 0x1e7   :  { %v1601_v60 = vpop.permute.xlu1 %1600 }
 0x1e8   :  { %v1787_v48 = vadd.f32 %v1786_v59, %v1785_v30  ;;  %v1792_v3 = vsel %vm1704_vm15, %v1601_v60, 0.0 }
 0x1e9   :  { %1139 = vperm.xlu1 %2126, %v3370_v58   ;;  %v1599_v26 = vpop.permute.xlu0 %1598 }
 0x1ea   :  { %v1789_v47 = vadd.f32 %v1788_v40, %v1787_v48  ;;  %v1790_v24 = vsel %vm1704_vm15, %v1599_v26, 0.0 }
 0x1eb   :  { %v1605_v49 = vpop.permute.xlu1 %1604 }
 0x1ec   :  { %v1791_v20 = vadd.f32 %v1790_v24, %v1789_v47  ;;  %v1796_v62 = vsel %vm1704_vm15, %v1605_v49, 0.0 }
 0x1ed   :  { %1149 = vperm.xlu1 %2126, %v3371_v22   ;;  %v1603_v37 = vpop.permute.xlu0 %1602  ;;  %v3372_v22 = vld [vmem:[#allocation60_spill] sm:$0xff] }
 0x1ee   :  { %v1793_v17 = vadd.f32 %v1792_v3, %v1791_v20  ;;  %v1794_v55 = vsel %vm1704_vm15, %v1603_v37, 0.0  ;;  %v3373_v3 = vld [vmem:[#allocation72_spill] sm:$0xff] }
 0x1ef   :  { %v1609_v33 = vpop.permute.xlu1 %1608 }
 0x1f0   :  { %v1795_v45 = vadd.f32 %v1794_v55, %v1793_v17  ;;  %v1800_v12 = vsel %vm1704_vm15, %v1609_v33, 0.0  ;;  %v3374_v17 = vld [vmem:[#allocation74_spill] sm:$0xff]  ;;  %v3375_v55 = vld [vmem:[#allocation76_spill] sm:$0xff] }
 0x1f1   :  { %1159 = vperm.xlu1 %2126, %v2870_v31   ;;  %v1607_v9 = vpop.permute.xlu0 %1606 }
 0x1f2   :  { %v1797_v23 = vadd.f32 %v1796_v62, %v1795_v45  ;;  %v1798_v39 = vsel %vm1704_vm15, %v1607_v9, 0.0  ;;  %v3376_v45 = vld [vmem:[#allocation78_spill] sm:$0xff] }
 0x1f3   :  { %v1613_v51 = vpop.permute.xlu1 %1612 }
 0x1f4   :  { %v1799_v44 = vadd.f32 %v1798_v39, %v1797_v23  ;;  %v1804_v7 = vsel %vm1704_vm15, %v1613_v51, 0.0  ;;  %v3377_v39 = vld [vmem:[#allocation27_spill] sm:$0xff] }
 0x1f5   :  { %v1611_v28 = vpop.permute.xlu0 %1610 }
 0x1f6   :  { %v1801_v35 = vadd.f32 %v1800_v12, %v1799_v44  ;;  %v1802_v53 = vsel %vm1704_vm15, %v1611_v28, 0.0 }
 0x1f7   :  { %v1617_v34 = vpop.permute.xlu1 %1616 }
 0x1f8   :  { %v1803_v15 = vadd.f32 %v1802_v53, %v1801_v35  ;;  %v1808_v32 = vsel %vm1704_vm15, %v1617_v34, 0.0  ;;  %v3378_v53 = vld [vmem:[#allocation30_spill] sm:$0xff] }
 0x1f9   :  { %v1615_v14 = vpop.permute.xlu0 %1614 }
 0x1fa   :  { %v1805_v31 = vadd.f32 %v1804_v7, %v1803_v15  ;;  %v1806_v56 = vsel %vm1704_vm15, %v1615_v14, 0.0  ;;  %v3379_v7 = vld [vmem:[#allocation25_spill] sm:$0xff] }
 0x1fb   :  { %v1621_v27 = vpop.permute.xlu1 %1620 }
 0x1fc   :  { %v1807_v42 = vadd.f32 %v1806_v56, %v1805_v31  ;;  %v1812_v10 = vsel %vm1704_vm15, %v1621_v27, 0.0 }
 0x1fd   :  { %v1619_v61 = vpop.permute.xlu0 %1618 }
 0x1fe   :  { %v1809_v4 = vadd.f32 %v1808_v32, %v1807_v42  ;;  %v1810_v41 = vsel %vm1704_vm15, %v1619_v61, 0.0 }
 0x1ff   :  { %v1625_v8 = vpop.permute.xlu1 %1624 }
 0x200   :  { %v1811_v18 = vadd.f32 %v1810_v41, %v1809_v4  ;;  %v1816_v2 = vsel %vm1704_vm15, %v1625_v8, 0.0  ;;  %v3380_v4 = vld [vmem:[#allocation28_spill] sm:$0xff] }
 0x201   :  { %v1623_v13 = vpop.permute.xlu0 %1622 }
 0x202   :  { %v1813_v11 = vadd.f32 %v1812_v10, %v1811_v18  ;;  %v1814_v29 = vsel %vm1704_vm15, %v1623_v13, 0.0  ;;  %v3381_v13 = vld [vmem:[#allocation33_spill] sm:$0xff] }
 0x203   :  { %v1629_v63 = vpop.permute.xlu1 %1628 }
 0x204   :  { %v1815_v19 = vadd.f32 %v1814_v29, %v1813_v11  ;;  %v1820_v25 = vsel %vm1704_vm15, %v1629_v63, 0.0 }
 0x205   :  { %v1627_v52 = vpop.permute.xlu0 %1626 }
 0x206   :  { %v1817_v6 = vadd.f32 %v1816_v2, %v1815_v19  ;;  %v1818_v16 = vsel %vm1704_vm15, %v1627_v52, 0.0  ;;  %v3382_v2 = vld [vmem:[#allocation36_spill] sm:$0xff] }
 0x207   :  { %v1633_v50 = vpop.permute.xlu1 %1632 }
 0x208   :  { %v1819_v0 = vadd.f32 %v1818_v16, %v1817_v6  ;;  %v1824_v30 = vsel %vm1704_vm15, %v1633_v50, 0.0 }
 0x209   :  { %v1631_v1 = vpop.permute.xlu0 %1630 }
 0x20a   :  { %v1821_v43 = vadd.f32 %v1820_v25, %v1819_v0  ;;  %v1822_v21 = vsel %vm1704_vm15, %v1631_v1, 0.0 }
 0x20b   :  { %v1637_v60 = vpop.permute.xlu1 %1636 }
 0x20c   :  { %v1823_v5 = vadd.f32 %v1822_v21, %v1821_v43  ;;  %v1828_v26 = vsel %vm1704_vm15, %v1637_v60, 0.0  ;;  %v3383_v21 = vld [vmem:[#allocation31_spill] sm:$0xff] }
 0x20d   :  { %v1635_v59 = vpop.permute.xlu0 %1634 }
 0x20e   :  { %v1825_v48 = vadd.f32 %v1824_v30, %v1823_v5  ;;  %v1826_v58 = vsel %vm1704_vm15, %v1635_v59, 0.0 }
 0x210   :  { %v1827_v40 = vadd.f32 %v1826_v58, %v1825_v48  ;;  %v2169_v37 = vpop.permute.xlu1 %2168  ;;  %v3384_v48 = vld [vmem:[#allocation34_spill] sm:$0xff] }
 0x211   :  { %v1639_v47 = vpop.permute.xlu0 %1638  ;;  %v2170_v62 = vunpack.i.l.bf16 %v2169_v37  ;;  %v2171_v44 = vunpack.i.h.bf16 %v2169_v37 }
 0x212   :  { %v1830_v24 = vsel %vm1704_vm15, %v1639_v47, 0.0  ;;  %v1829_v49 = vadd.f32 %v1828_v26, %v1827_v40  ;;  %v3385_v47 = vld [vmem:[#allocation39_spill] sm:$0xff] }
 0x213   :  { %v1187_v51 = vmul.f32 %v2170_v62, %v3377_v39  ;;  %v1188_v34 = vmul.f32 %v2171_v44, %v3378_v53  ;;  %v3386_v62 = vld [vmem:[#allocation42_spill] sm:$0xff] }
 0x214   :  { %v1831_v20 = vadd.f32 %v1830_v24, %v1829_v49  ;;  %v2179_v33 = vpop.permute.xlu1 %2178 }
 0x215   :  { %v2174_v23 = vpop.permute.xlu0 %2173  ;;  %v1396_v35 = vmul.f32 %v1187_v51, %v3377_v39  ;;  %v1323_v15 = vadd.f32 %v2981_v36, %v1187_v51  ;;  %v1397_v27 = vmul.f32 %v1188_v34, %v3378_v53  ;;  %v2180_v61 = vunpack.i.l.bf16 %v2179_v33 }
 0x216   :  { %1832 = vadd.xlane.f32.xlu0 %v1831_v20  ;;  %v2175_v12 = vunpack.i.l.bf16 %v2174_v23  ;;  %v2181_v10 = vunpack.i.h.bf16 %v2179_v33 }
 0x217   :  { %v1459_v31 = vadd.f32 %v2985_v46, %v1396_v35  ;;  %v1324_v42 = vadd.f32 %v1323_v15, %v1188_v34  ;;  %v1191_v11 = vmul.f32 %v2180_v61, %v3381_v13 }
 0x218   :  { %v3048_v9 = vpop.permute.xlu1 %2193  ;;  %v1189_v14 = vmul.f32 %v2175_v12, %v3379_v7  ;;  %v1192_v52 = vmul.f32 %v2181_v10, %v3382_v2  ;;  %v3387_v12 = vld [vmem:[#allocation37_spill] sm:$0xff] }
 0x219   :  { %v1460_v32 = vadd.f32 %v1459_v31, %v1397_v27  ;;  %v2184_v63 = vpop.permute.xlu0 %2183  ;;  %v1400_v6 = vmul.f32 %v1191_v11, %v3381_v13  ;;  %v3388_v31 = vld [vmem:[#allocation40_spill] sm:$0xff]  ;;  %v2196_v61 = vunpack.i.h.bf16 %v3048_v9 }
 0x21a   :  { %v1325_v8 = vadd.f32 %v1324_v42, %v1189_v14  ;;  %v2185_v0 = vunpack.i.l.bf16 %v2184_v63  ;;  %v1401_v1 = vmul.f32 %v1192_v52, %v3382_v2  ;;  %v2186_v43 = vunpack.i.h.bf16 %v2184_v63 }
 0x21c   :  { %v3053_v28 = vpop.permute.xlu1 %2203  ;;  %v1193_v5 = vmul.f32 %v2185_v0, %v3383_v21  ;;  %v1194_v58 = vmul.f32 %v2186_v43, %v3384_v48  ;;  %v3391_v0 = vld [vmem:[#allocation11_spill] sm:$0xff] }
 0x21d   :  { %v2205_v43 = vunpack.i.l.bf16 %v3053_v28 }
 0x21e   :  { %v1402_v26 = vmul.f32 %v3383_v21, %v1193_v5  ;;  %v3392_v21 = vld [vmem:[#allocation13_spill] sm:$0xff] }
 0x220   :  { %v3060_v56 = vpop.permute.xlu1 %1039 }
 0x224   :  { %v3065_v36 = vpop.permute.xlu1 %1044 }
 0x228   :  { %v2209_v50 = vpop.permute.xlu1 %2208 }
 0x229   :  { %v2210_v59 = vunpack.i.l.bf16 %v2209_v50  ;;  %v2211_v20 = vunpack.i.h.bf16 %v2209_v50 }
 0x22b   :  { %v1195_v24 = vmul.f32 %v2210_v59, %v3385_v47 }
 0x22c   :  { %1079 = vperm.xlu0 %2110, %v3372_v22   ;;  %v2189_v22 = vpop.permute.xlu0 %2188 }
 0x22d   :  { %v2191_v44 = vunpack.i.h.bf16 %v2189_v22 }
 0x230   :  { %1114 = vperm.xlu0 %2110, %v3373_v3   ;;  %v1403_v3 = vmul.f32 %v3384_v48, %v1194_v58  ;;  %v2199_v10 = vpop.permute.xlu0 %2198  ;;  %v2206_v48 = vunpack.i.h.bf16 %v3053_v28 }
 0x231   :  { %v2200_v63 = vunpack.i.l.bf16 %v2199_v10 }
 0x234   :  { %1124 = vperm.xlu0 %2110, %v3374_v17   ;;  %v1404_v17 = vmul.f32 %v1195_v24, %v3385_v47 }
 0x238   :  { %1134 = vperm.xlu0 %2110, %v3375_v55   ;;  %v1050_v55 = vpop.permute.xlu1 %1049 }
 0x23c   :  { %1144 = vperm.xlu0 %2110, %v3376_v45   ;;  %v2190_v45 = vunpack.i.l.bf16 %v2189_v22  ;;  %v1055_v15 = vpop.permute.xlu1 %1054 }
 0x23e   :  { %v1197_v35 = vmul.f32 %v2190_v45, %v3387_v12 }
 0x240   :  { %1154 = vperm.xlu0 %2110, %v2879_v38   ;;  %v2176_v38 = vunpack.i.h.bf16 %v2174_v23  ;;  %v1196_v23 = vmul.f32 %v2211_v20, %v3386_v62  ;;  %v1406_v27 = vmul.f32 %v3387_v12, %v1197_v35  ;;  %v3394_v20 = vld [vmem:[#allocation18_spill] sm:$0xff] }
 0x241   :  { %v1204_v22 = vmul.f32 %v2206_v48, %v3394_v20 }
 0x242   :  { %v1190_v41 = vmul.f32 %v2176_v38, %v3380_v4  ;;  %v1405_v53 = vmul.f32 %v1196_v23, %v3386_v62  ;;  %v1198_v38 = vmul.f32 %v2191_v44, %v3388_v31  ;;  %v3395_v62 = vld [vmem:[#allocation15_spill] sm:$0xff]  ;;  %v3396_v44 = vld [vmem:[#allocation17_spill] sm:$0xff] }
 0x243   :  { %v1413_v45 = vmul.f32 %v1204_v22, %v3394_v20  ;;  %v1206_v12 = vmul.f32 %v3396_v44, %v3065_v36  ;;  %v3399_v36 = vld [vmem:[#allocation20_spill] sm:$0xff] }
 0x244   :  { %1164 = vperm.xlu0 %2110, %v2896_v57   ;;  %v1398_v57 = vmul.f32 %v3379_v7, %v1189_v14  ;;  %v1399_v46 = vmul.f32 %v3380_v4, %v1190_v41  ;;  %v1326_v29 = vadd.f32 %v1325_v8, %v1190_v41  ;;  %v2195_v14 = vunpack.i.l.bf16 %v3048_v9  ;;  %v3389_v4 = vld [vmem:[#allocation12_spill] sm:$0xff] }
 0x245   :  { %v1407_v8 = vmul.f32 %v3388_v31, %v1198_v38  ;;  %v1201_v9 = vmul.f32 %v2200_v63, %v3391_v0  ;;  %v3404_v20 = vld [vmem:[#allocation32_spill] sm:$0xff] }
 0x246   :  { %v1461_v18 = vadd.f32 %v1460_v32, %v1398_v57  ;;  %v1327_v16 = vadd.f32 %v1326_v29, %v1191_v11  ;;  %v1060_v32 = vpop.permute.xlu1 %1059  ;;  %v1199_v41 = vmul.f32 %v2195_v14, %v3389_v4  ;;  %v3390_v11 = vld [vmem:[#allocation14_spill] sm:$0xff]  ;;  %v3397_v14 = vld [vmem:[#allocation23_spill] sm:$0xff] }
 0x247   :  { %v1207_v31 = vmul.f32 %v1050_v55, %v3397_v14  ;;  %v3400_v55 = vld [vmem:[#allocation26_spill] sm:$0xff] }
 0x248   :  { %v1462_v19 = vadd.f32 %v1461_v18, %v1399_v46  ;;  %v1328_v30 = vadd.f32 %v1327_v16, %v1192_v52  ;;  %v1200_v46 = vmul.f32 %v2196_v61, %v3390_v11  ;;  %v1408_v29 = vmul.f32 %v1199_v41, %v3389_v4  ;;  %v3398_v61 = vld [vmem:[#allocation29_spill] sm:$0xff] }
 0x249   :  { %v2201_v16 = vunpack.i.h.bf16 %v2199_v10  ;;  %v1208_v4 = vmul.f32 %v1055_v15, %v3398_v61  ;;  %v1209_v10 = vmul.f32 %v3399_v36, %v1060_v32  ;;  %v3401_v15 = vld [vmem:[#allocation35_spill] sm:$0xff] }
 0x24a   :  { %v1463_v25 = vadd.f32 %v1462_v19, %v1400_v6  ;;  %v1329_v40 = vadd.f32 %v1328_v30, %v1193_v5  ;;  %v1065_v2 = vpop.permute.xlu1 %1064  ;;  %v1409_v6 = vmul.f32 %v1200_v46, %v3390_v11  ;;  %v1410_v30 = vmul.f32 %v3391_v0, %v1201_v9 }
 0x24b   :  { %v1202_v5 = vmul.f32 %v2201_v16, %v3392_v21  ;;  %v1210_v63 = vmul.f32 %v3400_v55, %v1065_v2 }
 0x24c   :  { %v1464_v60 = vadd.f32 %v1463_v25, %v1401_v1  ;;  %v1330_v37 = vadd.f32 %v1329_v40, %v1194_v58  ;;  %v3393_v58 = vld [vmem:[#allocation16_spill] sm:$0xff] }
 0x24d   :  { %v1203_v40 = vmul.f32 %v2205_v43, %v3393_v58  ;;  %v1419_v0 = vmul.f32 %v3400_v55, %v1210_v63 }
 0x24e   :  { %v1465_v49 = vadd.f32 %v1464_v60, %v1402_v26  ;;  %v1331_v39 = vadd.f32 %v1330_v37, %v1195_v24  ;;  %v1070_v1 = vpop.permute.xlu1 %1069  ;;  %v1411_v26 = vmul.f32 %v3392_v21, %v1202_v5  ;;  %v3402_v21 = vld [vmem:[#allocation41_spill] sm:$0xff] }
 0x250   :  { %v1466_v33 = vadd.f32 %v1465_v49, %v1403_v3  ;;  %v1332_v34 = vadd.f32 %v1331_v39, %v1196_v23  ;;  %v1412_v3 = vmul.f32 %v1203_v40, %v3393_v58  ;;  %v1205_v23 = vmul.f32 %v3395_v62, %v3060_v56 }
 0x251   :  { %v1416_v56 = vmul.f32 %v1207_v31, %v3397_v14 }
 0x252   :  { %v1467_v51 = vadd.f32 %v1466_v33, %v1404_v17  ;;  %v1333_v42 = vadd.f32 %v1332_v34, %v1197_v35  ;;  %v1075_v24 = vpop.permute.xlu1 %1074 }
 0x253   :  { %v1212_v32 = vmul.f32 %v1075_v24, %v3402_v21 }
 0x254   :  { %v1468_v7 = vadd.f32 %v1467_v51, %v1405_v53  ;;  %v1334_v18 = vadd.f32 %v1333_v42, %v1198_v38  ;;  %v1414_v51 = vmul.f32 %v3395_v62, %v1205_v23 }
 0x255   :  { %v1421_v58 = vmul.f32 %v1212_v32, %v3402_v21 }
 0x256   :  { %v1469_v57 = vadd.f32 %v1468_v7, %v1406_v27  ;;  %v1335_v19 = vadd.f32 %v1334_v18, %v1199_v41  ;;  %v1085_v33 = vpop.permute.xlu1 %1084  ;;  %v1415_v7 = vmul.f32 %v3396_v44, %v1206_v12  ;;  %v1417_v18 = vmul.f32 %v1208_v4, %v3398_v61 }
 0x258   :  { %v1470_v13 = vadd.f32 %v1469_v57, %v1407_v8  ;;  %v1336_v50 = vadd.f32 %v1335_v19, %v1200_v46 }
 0x25a   :  { %v1471_v52 = vadd.f32 %v1470_v13, %v1408_v29  ;;  %v1337_v59 = vadd.f32 %v1336_v50, %v1201_v9  ;;  %v1090_v53 = vpop.permute.xlu1 %1089  ;;  %v1418_v29 = vmul.f32 %v3399_v36, %v1209_v10  ;;  %v1211_v9 = vmul.f32 %v1070_v1, %v3401_v15 }
 0x25c   :  { %v1472_v25 = vadd.f32 %v1471_v52, %v1409_v6  ;;  %v1338_v47 = vadd.f32 %v1337_v59, %v1202_v5 }
 0x25e   :  { %v1473_v60 = vadd.f32 %v1472_v25, %v1410_v30  ;;  %v1339_v37 = vadd.f32 %v1338_v47, %v1203_v40  ;;  %v1095_v42 = vpop.permute.xlu1 %1094  ;;  %v1420_v30 = vmul.f32 %v1211_v9, %v3401_v15  ;;  %v3403_v47 = vld [vmem:[#allocation38_spill] sm:$0xff] }
 0x260   :  { %v1474_v49 = vadd.f32 %v1473_v60, %v1411_v26  ;;  %v1340_v28 = vadd.f32 %v1339_v37, %v1204_v22 }
 0x262   :  { %v1475_v17 = vadd.f32 %v1474_v49, %v1412_v3  ;;  %v1341_v35 = vadd.f32 %v1340_v28, %v1205_v23  ;;  %v1100_v13 = vpop.permute.xlu1 %1099  ;;  %v1214_v49 = vmul.f32 %v3403_v47, %v1085_v33  ;;  %v3405_v3 = vld [vmem:[#allocation44_spill] sm:$0xff] }
 0x263   :  { %v1215_v37 = vmul.f32 %v1090_v53, %v3405_v3 }
 0x264   :  { %v1476_v39 = vadd.f32 %v1475_v17, %v1413_v45  ;;  %v1342_v38 = vadd.f32 %v1341_v35, %v1206_v12 }
 0x265   :  { %v1424_v33 = vmul.f32 %v1215_v37, %v3405_v3 }
 0x266   :  { %v1477_v34 = vadd.f32 %v1476_v39, %v1414_v51  ;;  %v1343_v57 = vadd.f32 %v1342_v38, %v1207_v31  ;;  %v1105_v52 = vpop.permute.xlu1 %1104  ;;  %v1423_v39 = vmul.f32 %v3403_v47, %v1214_v49  ;;  %v3406_v51 = vld [vmem:[#allocation46_spill] sm:$0xff] }
 0x267   :  { %v1216_v44 = vmul.f32 %v1095_v42, %v3406_v51  ;;  %v3409_v42 = vld [vmem:[#allocation48_spill] sm:$0xff] }
 0x268   :  { %v1478_v27 = vadd.f32 %v1477_v34, %v1415_v7  ;;  %v1344_v8 = vadd.f32 %v1343_v57, %v1208_v4  ;;  %v3407_v34 = vld [vmem:[#allocation43_spill] sm:$0xff] }
 0x269   :  { %v1217_v7 = vmul.f32 %v3407_v34, %v1100_v13  ;;  %v1425_v38 = vmul.f32 %v1216_v44, %v3406_v51  ;;  %v3410_v13 = vld [vmem:[#allocation50_spill] sm:$0xff] }
 0x26a   :  { %v1479_v41 = vadd.f32 %v1478_v27, %v1416_v56  ;;  %v1345_v46 = vadd.f32 %v1344_v8, %v1209_v10  ;;  %v1110_v60 = vpop.permute.xlu1 %1109  ;;  %v3408_v27 = vld [vmem:[#allocation45_spill] sm:$0xff] }
 0x26b   :  { %v1218_v57 = vmul.f32 %v3408_v27, %v1105_v52  ;;  %v1219_v8 = vmul.f32 %v1110_v60, %v3409_v42 }
 0x26c   :  { %v1480_v11 = vadd.f32 %v1479_v41, %v1417_v18  ;;  %v1346_v16 = vadd.f32 %v1345_v46, %v1210_v63  ;;  %v1426_v41 = vmul.f32 %v3407_v34, %v1217_v7 }
 0x26d   :  { %v1428_v63 = vmul.f32 %v1219_v8, %v3409_v42 }
 0x26e   :  { %v1481_v19 = vadd.f32 %v1480_v11, %v1418_v29  ;;  %v1347_v5 = vadd.f32 %v1346_v16, %v1211_v9  ;;  %v1120_v23 = vpop.permute.xlu1 %1119  ;;  %v1427_v11 = vmul.f32 %v3408_v27, %v1218_v57  ;;  %v3419_v27 = vld [vmem:[#allocation61_spill] sm:$0xff] }
 0x270   :  { %v1482_v25 = vadd.f32 %v1481_v19, %v1419_v0  ;;  %v1348_v26 = vadd.f32 %v1347_v5, %v1212_v32  ;;  %v3411_v19 = vld [vmem:[#allocation47_spill] sm:$0xff]  ;;  %v3413_v5 = vld [vmem:[#allocation53_spill] sm:$0xff] }
 0x271   :  { %v1221_v52 = vmul.f32 %v3411_v19, %v1120_v23 }
 0x272   :  { %v1483_v48 = vadd.f32 %v1482_v25, %v1420_v30  ;;  %v1130_v4 = vpop.permute.xlu1 %1129  ;;  %v3412_v25 = vld [vmem:[#allocation49_spill] sm:$0xff] }
 0x273   :  { %v1430_v32 = vmul.f32 %v3411_v19, %v1221_v52  ;;  %v1223_v30 = vmul.f32 %v1130_v4, %v3413_v5 }
 0x274   :  { %v1484_v17 = vadd.f32 %v1483_v48, %v1421_v58 }
 0x276   :  { %v1140_v0 = vpop.permute.xlu1 %1139 }
 0x27a   :  { %v1150_v47 = vpop.permute.xlu1 %1149 }
 0x29f   :  { %v1833_v6 = vpop.xlane.xlu0 %1832 }
 0x2a0   :  { %v1834_v50 = vrot.slane %v1833_v6, 4 }
 0x2a2   :  { %v1835_v43 = vadd.f32 %v1834_v50, %v1833_v6 }
 0x2a4   :  { %v1836_v59 = vrot.slane %v1835_v43, 2 }
 0x2a6   :  { %v1837_v2 = vadd.f32 %v1836_v59, %v1835_v43 }
 0x2a7   :  { %v1080_v40 = vpop.permute.xlu0 %1079 }
 0x2a8   :  { %v1213_v1 = vmul.f32 %v3404_v20, %v1080_v40  ;;  %v1838_v22 = vrot.slane %v1837_v2, 1  ;;  %v3414_v40 = vld [vmem:[#allocation58_spill] sm:$0xff] }
 0x2aa   :  { %v1349_v24 = vadd.f32 %v1348_v26, %v1213_v1  ;;  %v1422_v45 = vmul.f32 %v3404_v20, %v1213_v1  ;;  %v1839_v62 = vadd.f32 %v1838_v22, %v1837_v2  ;;  %v3415_v20 = vld [vmem:[#allocation51_spill] sm:$0xff] }
 0x2ab   :  { %v1115_v28 = vpop.permute.xlu0 %1114  ;;  %v1225_v1 = vmul.f32 %v3415_v20, %v1140_v0 }
 0x2ac   :  { %v1350_v12 = vadd.f32 %v1349_v24, %v1214_v49  ;;  %v1485_v35 = vadd.f32 %v1484_v17, %v1422_v45  ;;  %2100 = vpush %v1839_v62  ;;  %v1220_v46 = vmul.f32 %v1115_v28, %v3410_v13  ;;  %v1432_v49 = vmul.f32 %v1223_v30, %v3413_v5  ;;  %v3416_v62 = vld [vmem:[#allocation55_spill] sm:$0xff] }
 0x2ad   :  { %v1434_v28 = vmul.f32 %v3415_v20, %v1225_v1 }
 0x2ae   :  { %v1351_v14 = vadd.f32 %v1350_v12, %v1215_v37  ;;  %v1486_v53 = vadd.f32 %v1485_v35, %v1423_v39  ;;  %v1429_v9 = vmul.f32 %v1220_v46, %v3410_v13  ;;  %v3417_v39 = vld [vmem:[#allocation64_spill] sm:$0xff]  ;;  %v1160_v35 = vpop.permute.xlu1 %1159 }
 0x2af   :  { %v1125_v31 = vpop.permute.xlu0 %1124  ;;  %v1227_v51 = vmul.f32 %v1150_v47, %v3417_v39 }
 0x2b0   :  { %v1352_v56 = vadd.f32 %v1351_v14, %v1216_v44  ;;  %v1487_v61 = vadd.f32 %v1486_v53, %v1424_v33  ;;  %v1222_v43 = vmul.f32 %v3412_v25, %v1125_v31  ;;  %v3418_v14 = vld [vmem:[#allocation68_spill] sm:$0xff] }
 0x2b2   :  { %v1488_v18 = vadd.f32 %v1487_v61, %v1425_v38  ;;  %v1353_v36 = vadd.f32 %v1352_v56, %v1217_v7  ;;  %v1431_v2 = vmul.f32 %v3412_v25, %v1222_v43  ;;  %v1436_v38 = vmul.f32 %v1227_v51, %v3417_v39 }
 0x2b3   :  { %v1135_v10 = vpop.permute.xlu0 %1134 }
 0x2b4   :  { %v1354_v29 = vadd.f32 %v1353_v36, %v1218_v57  ;;  %v1489_v55 = vadd.f32 %v1488_v18, %v1426_v41  ;;  %v1224_v26 = vmul.f32 %v1135_v10, %v3414_v40  ;;  %v1229_v57 = vmul.f32 %v3419_v27, %v1160_v35 }
 0x2b6   :  { %v1355_v6 = vadd.f32 %v1354_v29, %v1219_v8  ;;  %v1490_v16 = vadd.f32 %v1489_v55, %v1427_v11  ;;  %v1433_v24 = vmul.f32 %v1224_v26, %v3414_v40  ;;  %v1438_v18 = vmul.f32 %v3419_v27, %v1229_v57 }
 0x2b7   :  { %v1145_v21 = vpop.permute.xlu0 %1144 }
 0x2b8   :  { %v1356_v15 = vadd.f32 %v1355_v6, %v1220_v46  ;;  %v1491_v50 = vadd.f32 %v1490_v16, %v1428_v63  ;;  %v1226_v23 = vmul.f32 %v3416_v62, %v1145_v21  ;;  %v1375_v21 = vld [vmem:[#allocation7 + $0x2] sm:$0x1] }
 0x2ba   :  { %v1492_v59 = vadd.f32 %v1491_v50, %v1429_v9  ;;  %v1357_v60 = vadd.f32 %v1356_v15, %v1221_v52  ;;  %v1435_v34 = vmul.f32 %v3416_v62, %v1226_v23  ;;  %v1303_v50 = vld [vmem:[#allocation7 + $0x1] sm:$0x1] }
 0x2bb   :  { %v1155_v37 = vpop.permute.xlu0 %1154 }
 0x2bc   :  { %v1358_v48 = vadd.f32 %v1357_v60, %v1222_v43  ;;  %v1493_v58 = vadd.f32 %v1492_v59, %v1430_v32  ;;  %v1228_v53 = vmul.f32 %v1155_v37, %v3418_v14 }
 0x2be   :  { %v1494_v22 = vadd.f32 %v1493_v58, %v1431_v2  ;;  %v1359_v3 = vadd.f32 %v1358_v48, %v1223_v30  ;;  %v1437_v41 = vmul.f32 %v1228_v53, %v3418_v14 }
 0x2bf   :  { %v1165_v31 = vpop.permute.xlu0 %1164 }
 0x2c0   :  { %v1360_v17 = vadd.f32 %v1359_v3, %v1224_v26  ;;  %v1495_v45 = vadd.f32 %v1494_v22, %v1432_v49  ;;  %v1230_v8 = vmul.f32 %v2778_v54, %v1165_v31 }
 0x2c2   :  { %v1496_v44 = vadd.f32 %v1495_v45, %v1433_v24  ;;  %v1361_v12 = vadd.f32 %v1360_v17, %v1225_v1  ;;  %v1439_v13 = vmul.f32 %v2778_v54, %v1230_v8  ;;  %v1511_v54 = vld [vmem:[#allocation7 + $0x3] sm:$0x1] }
 0x2c4   :  { %v1362_v33 = vadd.f32 %v1361_v12, %v1226_v23  ;;  %v1497_v7 = vadd.f32 %v1496_v44, %v1434_v28 }
 0x2c6   :  { %v1498_v56 = vadd.f32 %v1497_v7, %v1435_v34  ;;  %v1363_v61 = vadd.f32 %v1362_v33, %v1227_v51 }
 0x2c8   :  { %v1364_v4 = vadd.f32 %v1363_v61, %v1228_v53  ;;  %v1499_v42 = vadd.f32 %v1498_v56, %v1436_v38 }
 0x2ca   :  { %v1500_v36 = vadd.f32 %v1499_v42, %v1437_v41  ;;  %v1365_v10 = vadd.f32 %v1364_v4, %v1229_v57 }
 0x2cc   :  { %v1366_v11 = vadd.f32 %v1365_v10, %v1230_v8  ;;  %v1501_v46 = vadd.f32 %v1500_v36, %v1438_v18 }
 0x2ce   :  { %v1367_v29 = vrot.slane %v1366_v11, 4  ;;  %v1502_v55 = vadd.f32 %v1501_v46, %v1439_v13 }
 0x2d0   :  { %v1368_v63 = vadd.f32 %v1367_v29, %v1366_v11  ;;  %v1503_v19 = vrot.slane %v1502_v55, 4 }
 0x2d2   :  { %v1369_v52 = vrot.slane %v1368_v63, 2  ;;  %v1504_v6 = vadd.f32 %v1503_v19, %v1502_v55 }
 0x2d4   :  { %v1370_v16 = vadd.f32 %v1369_v52, %v1368_v63  ;;  %v1505_v0 = vrot.slane %v1504_v6, 2 }
 0x2d6   :  { %v1371_v15 = vrot.slane %v1370_v16, 1  ;;  %v1506_v9 = vadd.f32 %v1505_v0, %v1504_v6 }
 0x2d8   :  { %v1372_v25 = vadd.f32 %v1371_v15, %v1370_v16  ;;  %v1507_v43 = vrot.slane %v1506_v9, 1 }
 0x2da   :  { %v1373_v32 = vadd.f32 %v1372_v25, %v1303_v50  ;;  %v1508_v5 = vadd.f32 %v1507_v43, %v1506_v9 }
 0x2dc   :  { %v1509_v30 = vadd.f32 %v1508_v5, %v1375_v21  ;;  %1374 = vst [vmem:[#allocation7 + $0x1] sm:$0x1] %v1373_v32 }
 0x2dd   :  { %s2101_s22 = spop %2100 }
 0x2de   :  { %1510 = vst [vmem:[#allocation7 + $0x2] sm:$0x1] %v1509_v30  ;;  %v1841_v59 = vstv %s2101_s22 }
 0x2df   :  { %v1842_v60 = vadd.f32 %v1841_v59, %v1511_v54 }
 0x2e1   :  { %1843 = vst [vmem:[#allocation7 + $0x3] sm:$0x1] %v1842_v60 }
 0x2e2   :  { %2303 = shalt.err (!%p2300_p0)
}
 0x2e3   :  { %1853 = dma.vmem_to_hbm [thread:$0]  %s1851_s21, 128, %s3159_s2, [#allocation4]  }
 0x2e4   :  { %2316 = dma.done.wait [#allocation4], 128  }
 0x2e5   :  { %2317 = vsyncadd [#allocation4], 4294967168 }
 0x2e6   :  { %1857 = vsyncpa [#allocation3], 1 }
 0x2e7   :  { %1858 = vsyncpa [#allocation6], 1 }
 0x2e8   :  { %1859 = vsyncpa [#allocation4], 1 }

</bundles_post_ra>
